<compile_context>
chip_gen: v7x
topology: tpu7x:2x2x1
jax: 0.10.0
libtpu: 0.0.40
codegen_flags: <defaults>
</compile_context>

<pallas_src>
import functools

import jax
import jax.numpy as jnp
from jax.experimental import pallas as pl
from jax.experimental.pallas import tpu as pltpu


COMPUTE_DTYPE = jnp.bfloat16

# Tile-size targets.  These are sized for v5e/v6e (128 MiB VMEM); on v7x
# (64 MiB VMEM) halving TM / TK keeps double-buffered tiles resident.
TM_TARGET = 256   # rows  (multiple of 8)
TN_TARGET = 256   # cols  (multiple of 128)
TK_TARGET = 512   # contraction (multiple of 128)


def _pick_tile(dim, target, align):
    """Largest divisor of `dim` that is <= target and a multiple of `align`.

    Falls back to the full dimension (always legal for Pallas block shapes).
    """
    if dim <= target:
        return dim
    for cand in range(target, 0, -1):
        if dim % cand == 0 and cand % align == 0:
            return cand
    return dim


# ----------------------------- Pallas kernels -----------------------------

def _linear_kernel(x_ref, w_ref, b_ref, o_ref, acc_ref, *, activation):
    # Tiled  o = act(x @ w + b)      x: (tm, tk)  w: (tk, tn)  b: (1, tn)
    k = pl.program_id(2)

    @pl.when(k == 0)
    def _():
        acc_ref[...] = jnp.zeros_like(acc_ref)

    acc_ref[...] += jnp.dot(x_ref[...], w_ref[...],
                            preferred_element_type=jnp.float32)

    @pl.when(k == pl.num_programs(2) - 1)
    def _():
        y = acc_ref[...] + b_ref[...]
        if activation == "relu":
            y = jnp.maximum(y, 0.0)
        o_ref[...] = y.astype(o_ref.dtype)


def _linear_add_ln_kernel(x_ref, w_ref, b_ref, res_ref, g_ref, beta_ref,
                          o_ref, acc_ref):
    # Tiled  o = LayerNorm(x @ w + b + residual) * gamma + beta
    # Grid: (M//tm, K//tk); N (=E) is kept whole so the LN reduction stays
    # inside one block.  LN math rides VPU/EUP while the MXU drains.
    k = pl.program_id(1)

    @pl.when(k == 0)
    def _():
        acc_ref[...] = jnp.zeros_like(acc_ref)

    acc_ref[...] += jnp.dot(x_ref[...], w_ref[...],
                            preferred_element_type=jnp.float32)

    @pl.when(k == pl.num_programs(1) - 1)
    def _():
        z = acc_ref[...] + b_ref[...] + res_ref[...].astype(jnp.float32)
        mean = jnp.mean(z, axis=-1, keepdims=True)
        zc = z - mean
        var = jnp.mean(zc * zc, axis=-1, keepdims=True)
        inv = jax.lax.rsqrt(var + 1e-5)
        o_ref[...] = (zc * inv * g_ref[...] + beta_ref[...]).astype(o_ref.dtype)


def _attention_kernel(qkv_ref, o_ref, *, num_heads, seq_valid):
    # One batch per grid step; the fused QKV block is (1, S_pad, 3E).
    # Q/K/V and the per-head slices are taken statically on the lane dim in
    # VMEM (no HBM slice copies, no head transposes) and the output is
    # written as a lane-dense (S_pad, E) slab.
    qkv = qkv_ref[0]                  # (S, 3E)  bf16
    S = qkv.shape[0]
    E = qkv.shape[1] // 3
    q = qkv[:, :E]
    k = qkv[:, E:2 * E]
    v = qkv[:, 2 * E:]
    Dh = E // num_heads
    scale = 1.0 / jnp.sqrt(jnp.float32(Dh))

    if S > seq_valid:
        key_ids = jax.lax.broadcasted_iota(jnp.int32, (S, S), 1)
        neg = jnp.where(key_ids < seq_valid, 0.0, -1e30).astype(jnp.float32)
    else:
        neg = jnp.zeros((S, S), jnp.float32)

    outs = []
    for h in range(num_heads):                       # static unroll
        qh = q[:, h * Dh:(h + 1) * Dh]
        kh = k[:, h * Dh:(h + 1) * Dh]
        vh = v[:, h * Dh:(h + 1) * Dh]
        s = jax.lax.dot_general(qh, kh, (((1,), (1,)), ((), ())),
                                preferred_element_type=jnp.float32)
        s = s * scale + neg
        m = jnp.max(s, axis=-1, keepdims=True)
        p = jnp.exp(s - m)
        denom = jnp.sum(p, axis=-1, keepdims=True)
        out_h = jnp.dot(p.astype(v.dtype), vh,
                        preferred_element_type=jnp.float32)
        outs.append(out_h * pl.reciprocal(denom, approx=True))

    o_ref[0] = jnp.concatenate(outs, axis=-1).astype(o_ref.dtype)


# ----------------------------- kernel wrappers -----------------------------

def pallas_linear(x2d, w, b, activation=None, out_dtype=None):
    M, K = x2d.shape
    _, N = w.shape
    tm = _pick_tile(M, TM_TARGET, 8)
    tn = _pick_tile(N, TN_TARGET, 128)
    tk = _pick_tile(K, TK_TARGET, 128)
    grid = (M // tm, N // tn, K // tk)

    return pl.pallas_call(
        functools.partial(_linear_kernel, activation=activation),
        out_shape=jax.ShapeDtypeStruct((M, N), out_dtype or x2d.dtype),
        grid=grid,
        in_specs=[
            pl.BlockSpec((tm, tk), lambda i, j, k: (i, k)),
            pl.BlockSpec((tk, tn), lambda i, j, k: (k, j)),
            pl.BlockSpec((1, tn), lambda i, j, k: (0, j)),
        ],
        out_specs=pl.BlockSpec((tm, tn), lambda i, j, k: (i, j)),
        scratch_shapes=[pltpu.VMEM((tm, tn), jnp.float32)],
        compiler_params=pltpu.CompilerParams(
            dimension_semantics=("parallel", "parallel", "arbitrary")),
    )(x2d, w, b.reshape(1, N))


def pallas_linear_add_ln(x2d, w, b, res, gamma, beta):
    M, K = x2d.shape
    _, N = w.shape            # N == E (LayerNorm width) kept whole per block
    tm = _pick_tile(M, TM_TARGET, 8)
    tk = _pick_tile(K, TK_TARGET, 128)
    grid = (M // tm, K // tk)

    return pl.pallas_call(
        _linear_add_ln_kernel,
        out_shape=jax.ShapeDtypeStruct((M, N), res.dtype),
        grid=grid,
        in_specs=[
            pl.BlockSpec((tm, tk), lambda i, k: (i, k)),
            pl.BlockSpec((tk, N), lambda i, k: (k, 0)),
            pl.BlockSpec((1, N), lambda i, k: (0, 0)),
            pl.BlockSpec((tm, N), lambda i, k: (i, 0)),
            pl.BlockSpec((1, N), lambda i, k: (0, 0)),
            pl.BlockSpec((1, N), lambda i, k: (0, 0)),
        ],
        out_specs=pl.BlockSpec((tm, N), lambda i, k: (i, 0)),
        scratch_shapes=[pltpu.VMEM((tm, N), jnp.float32)],
        compiler_params=pltpu.CompilerParams(
            dimension_semantics=("parallel", "arbitrary")),
    )(x2d, w, b.reshape(1, N), res, gamma.reshape(1, N), beta.reshape(1, N))


def pallas_attention(qkv, num_heads, seq_valid):
    # qkv: (B, S, 3E) fused projection output.
    B, S, E3 = qkv.shape
    E = E3 // 3
    return pl.pallas_call(
        functools.partial(_attention_kernel,
                          num_heads=num_heads, seq_valid=seq_valid),
        out_shape=jax.ShapeDtypeStruct((B, S, E), qkv.dtype),
        grid=(B,),
        in_specs=[pl.BlockSpec((1, S, E3), lambda b: (b, 0, 0))],
        out_specs=pl.BlockSpec((1, S, E), lambda b: (b, 0, 0)),
        compiler_params=pltpu.CompilerParams(dimension_semantics=("parallel",)),
    )(qkv)


# ----------------------------- ViT forward -----------------------------

def init_params(key, image_size, patch_size, num_channels, num_classes,
                embedding_size, num_heads, num_layers, dtype=COMPUTE_DTYPE):
    num_patches = (image_size // patch_size) ** 2
    seq_length = num_patches + 1
    E = embedding_size
    ks = jax.random.split(key, 8 + num_layers)

    def nrm(k, shape, scale=0.02):
        return (scale * jax.random.normal(k, shape, dtype=jnp.float32)).astype(dtype)

    params = {
        # conv weight stored pre-flattened as (C*P*P, E) for the matmul form.
        "conv_w_flat": nrm(ks[0], (num_channels * patch_size * patch_size, E)),
        "conv_b": jnp.zeros((E,), jnp.float32),
        "class_token": jax.random.normal(ks[1], (1, 1, E), dtype=jnp.float32),
        "pos_emb": jax.random.normal(ks[2], (1, seq_length, E), dtype=jnp.float32),
        "mlp_w": nrm(ks[3], (E, num_classes)),
        "mlp_b": jnp.zeros((num_classes,), jnp.float32),
        "layers": [],
    }
    for li in range(num_layers):
        lk = jax.random.split(ks[8 + li], 8)
        wq, wk, wv = nrm(lk[0], (E, E)), nrm(lk[1], (E, E)), nrm(lk[2], (E, E))
        params["layers"].append({
            "wqkv": jnp.concatenate([wq, wk, wv], axis=1),   # fused (E, 3E)
            "bqkv": jnp.zeros((3 * E,), jnp.float32),
            "wo": nrm(lk[3], (E, E)), "bo": jnp.zeros((E,), jnp.float32),
            "ln1_g": jnp.ones((E,), jnp.float32), "ln1_b": jnp.zeros((E,), jnp.float32),
            "w1": nrm(lk[4], (E, 4 * E)), "b1": jnp.zeros((4 * E,), jnp.float32),
            "w2": nrm(lk[5], (4 * E, E)), "b2": jnp.zeros((E,), jnp.float32),
            "ln2_g": jnp.ones((E,), jnp.float32), "ln2_b": jnp.zeros((E,), jnp.float32),
        })
    return params


def encoder_layer(x, p, num_heads, seq_valid):
    B, S, E = x.shape
    x2 = x.reshape(B * S, E)

    # Fused QKV projection: one (B*S, E) x (E, 3E) matmul.
    qkv = pallas_linear(x2, p["wqkv"], p["bqkv"]).reshape(B, S, 3 * E)

    # Multi-head attention, Q/K/V + heads sliced inside the kernel
    # (no HBM slice copies, no head transposes).
    attn = pallas_attention(qkv, num_heads, seq_valid)            # (B, S, E)
    attn2 = attn.reshape(B * S, E)

    # Output projection fused with residual-add + LayerNorm (post-norm).
    y = pallas_linear_add_ln(attn2, p["wo"], p["bo"], x2, p["ln1_g"], p["ln1_b"])

    # MLP: expand (ReLU) then contract fused with residual-add + LayerNorm.
    h1 = pallas_linear(y, p["w1"], p["b1"], activation="relu")
    out = pallas_linear_add_ln(h1, p["w2"], p["b2"], y, p["ln2_g"], p["ln2_b"])
    return out.reshape(B, S, E)


@functools.partial(jax.jit, static_argnames=("patch_size", "num_heads"))
def vit_forward(params, x, *, patch_size, num_heads):
    # x: (B, C, H, W)  -- PyTorch NCHW layout
    B, C, H, W = x.shape
    P = patch_size
    Hp, Wp = H // P, W // P
    Np = Hp * Wp
    E = params["conv_w_flat"].shape[1]

    # --- patch-embedding conv as a tiled Pallas matmul ---
    patches = x.reshape(B, C, Hp, P, Wp, P).transpose(0, 2, 4, 1, 3, 5)
    patches = patches.reshape(B * Np, C * P * P).astype(COMPUTE_DTYPE)
    emb = pallas_linear(patches, params["conv_w_flat"], params["conv_b"])
    emb_proper = emb.reshape(B, Np, E)                # conv output, NHWC-style

    # --- replicate the PyTorch `.view(B, -1, E)` memory reinterpretation ---
    # (faithful to the referenced code; it mixes feature/patch dims)
    embeddings = jnp.transpose(emb_proper, (0, 2, 1)).reshape(B, Np, E)

    # --- class token + positional embeddings (glue, f32 then cast) ---
    cls = jnp.broadcast_to(params["class_token"], (B, 1, E))
    tokens = jnp.concatenate([cls, embeddings.astype(jnp.float32)], axis=1)
    tokens = (tokens + params["pos_emb"]).astype(COMPUTE_DTYPE)    # (B, S, E)

    # --- pad sequence to a multiple of 8 sublanes; attention masks pad keys ---
    S = Np + 1
    S_pad = ((S + 7) // 8) * 8
    if S_pad != S:
        tokens = jnp.pad(tokens, ((0, 0), (0, S_pad - S), (0, 0)))

    # --- transformer encoder ---
    h = tokens
    for layer_params in params["layers"]:
        h = encoder_layer(h, layer_params, num_heads, seq_valid=S)

    # --- classification head on class token ---
    cls_out = h[:, 0]                                              # (B, E)
    logits = pallas_linear(cls_out, params["mlp_w"], params["mlp_b"],
                           out_dtype=jnp.float32)
    return logits


# ----------------------------- main -----------------------------

if __name__ == "__main__":
    # Small shapes consistent with the module's forward.
    IMAGE_SIZE = 16
    PATCH_SIZE = 4
    NUM_CHANNELS = 4
    NUM_CLASSES = 10
    EMBEDDING_SIZE = 32
    NUM_HEADS = 4
    NUM_LAYERS = 2
    BATCH = 2

    key = jax.random.PRNGKey(0)
    pkey, xkey = jax.random.split(key)

    params = init_params(pkey, IMAGE_SIZE, PATCH_SIZE, NUM_CHANNELS,
                         NUM_CLASSES, EMBEDDING_SIZE, NUM_HEADS, NUM_LAYERS)
    x = jax.random.normal(xkey, (BATCH, NUM_CHANNELS, IMAGE_SIZE, IMAGE_SIZE),
                          dtype=jnp.float32)

    logits = vit_forward(params, x, patch_size=PATCH_SIZE, num_heads=NUM_HEADS)
    logits = jax.block_until_ready(logits)
    assert logits.shape == (BATCH, NUM_CLASSES)
    assert jnp.all(jnp.isfinite(logits))
    print("KERNEL_OK")
</pallas_src>

<mosaic_0001>
module attributes {stable_mosaic.version = 11 : i64} {
  func.func @_linear_kernel(%arg0: i32, %arg1: i32, %arg2: i32, %arg3: memref<32x64xbf16, #tpu.memory_space<vmem>>, %arg4: memref<64x32xbf16, #tpu.memory_space<vmem>>, %arg5: memref<1x32xf32, #tpu.memory_space<vmem>>, %arg6: memref<32x32xbf16, #tpu.memory_space<vmem>>, %arg7: memref<32x32xf32, #tpu.memory_space<vmem>>) attributes {dimension_semantics = [#tpu.dimension_semantics<parallel>, #tpu.dimension_semantics<parallel>, #tpu.dimension_semantics<arbitrary>], iteration_bounds = array<i64: 1, 1, 1>, scalar_prefetch = 0 : i64, scratch_operands = 1 : i64, tpu.core_type = #tpu.core_type<tc>, window_params = [{transform_indices = @transform_0, window_bounds = array<i64: 32, 64>}, {transform_indices = @transform_1, window_bounds = array<i64: 64, 32>}, {transform_indices = @transform_2, window_bounds = array<i64: 1, 32>}, {transform_indices = @transform_3, window_bounds = array<i64: 32, 32>}]} {
    %c0_i32 = arith.constant 0 : i32
    %0 = arith.cmpi eq, %arg2, %c0_i32 : i32
    %1 = arith.extui %0 : i1 to i32
    %c0_i32_0 = arith.constant 0 : i32
    %2 = arith.cmpi ne, %1, %c0_i32_0 : i32
    scf.if %2 {
      %cst_10 = arith.constant 0.000000e+00 : f32
      %12 = vector.broadcast %cst_10 : f32 to vector<32x32xf32>
      %c0_11 = arith.constant 0 : index
      %c0_12 = arith.constant 0 : index
      %13 = vector.load %arg7[%c0_11, %c0_12] : memref<32x32xf32, #tpu.memory_space<vmem>>, vector<32x32xf32>
      tpu.vector_store %arg7[%c0_11, %c0_12], %12 {strides = array<i32>} : memref<32x32xf32, #tpu.memory_space<vmem>>, vector<32x32xf32>,
    } else {
    }
    %c0 = arith.constant 0 : index
    %c0_1 = arith.constant 0 : index
    %3 = vector.load %arg7[%c0, %c0_1] : memref<32x32xf32, #tpu.memory_space<vmem>>, vector<32x32xf32>
    %c0_2 = arith.constant 0 : index
    %c0_3 = arith.constant 0 : index
    %4 = vector.load %arg3[%c0_2, %c0_3] : memref<32x64xbf16, #tpu.memory_space<vmem>>, vector<32x64xbf16>
    %c0_4 = arith.constant 0 : index
    %c0_5 = arith.constant 0 : index
    %5 = vector.load %arg4[%c0_4, %c0_5] : memref<64x32xbf16, #tpu.memory_space<vmem>>, vector<64x32xbf16>
    %cst = arith.constant dense<0.000000e+00> : vector<32x32xf32>
    %6 = tpu.matmul %4, %5, %cst {dimension_numbers = #tpu.dot_dimension_numbers<[1], [0], [0], [1], [0, 0, 1, 1], [], []>} : vector<32x64xbf16>, vector<64x32xbf16>, vector<32x32xf32> -> vector<32x32xf32>
    %7 = arith.addf %3, %6 : vector<32x32xf32>
    %c0_6 = arith.constant 0 : index
    %c0_7 = arith.constant 0 : index
    %8 = vector.load %arg7[%c0_6, %c0_7] : memref<32x32xf32, #tpu.memory_space<vmem>>, vector<32x32xf32>
    tpu.vector_store %arg7[%c0_6, %c0_7], %7 {strides = array<i32>} : memref<32x32xf32, #tpu.memory_space<vmem>>, vector<32x32xf32>,
    %c0_i32_8 = arith.constant 0 : i32
    %9 = arith.cmpi eq, %arg2, %c0_i32_8 : i32
    %10 = arith.extui %9 : i1 to i32
    %c0_i32_9 = arith.constant 0 : i32
    %11 = arith.cmpi ne, %10, %c0_i32_9 : i32
    scf.if %11 {
      %c0_10 = arith.constant 0 : index
      %c0_11 = arith.constant 0 : index
      %12 = vector.load %arg7[%c0_10, %c0_11] : memref<32x32xf32, #tpu.memory_space<vmem>>, vector<32x32xf32>
      %c0_12 = arith.constant 0 : index
      %c0_13 = arith.constant 0 : index
      %13 = vector.load %arg5[%c0_12, %c0_13] : memref<1x32xf32, #tpu.memory_space<vmem>>, vector<1x32xf32>
      %14 = vector.broadcast %13 : vector<1x32xf32> to vector<32x32xf32>
      %15 = arith.addf %12, %14 : vector<32x32xf32>
      %16 = arith.truncf %15 : vector<32x32xf32> to vector<32x32xbf16>
      %c0_14 = arith.constant 0 : index
      %c0_15 = arith.constant 0 : index
      %17 = vector.load %arg6[%c0_14, %c0_15] : memref<32x32xbf16, #tpu.memory_space<vmem>>, vector<32x32xbf16>
      tpu.vector_store %arg6[%c0_14, %c0_15], %16 {strides = array<i32>} : memref<32x32xbf16, #tpu.memory_space<vmem>>, vector<32x32xbf16>,
    } else {
    }
    return
  }
  func.func @transform_0(%arg0: i32, %arg1: i32, %arg2: i32) -> (i32, i32) {
    %c0_i32 = arith.constant 0 : i32
    return %arg0, %arg2 : i32, i32
  }
  func.func @transform_1(%arg0: i32, %arg1: i32, %arg2: i32) -> (i32, i32) {
    %c0_i32 = arith.constant 0 : i32
    return %arg2, %arg1 : i32, i32
  }
  func.func @transform_2(%arg0: i32, %arg1: i32, %arg2: i32) -> (i32, i32) {
    %c0_i32 = arith.constant 0 : i32
    %c0_i32_0 = arith.constant 0 : i32
    return %c0_i32, %arg1 : i32, i32
  }
  func.func @transform_3(%arg0: i32, %arg1: i32, %arg2: i32) -> (i32, i32) {
    %c0_i32 = arith.constant 0 : i32
    return %arg0, %arg1 : i32, i32
  }
}

module attributes {stable_mosaic.version = 11 : i64} {
  func.func @_linear_kernel(%arg0: i32, %arg1: i32, %arg2: i32, %arg3: memref<48x32xbf16, #tpu.memory_space<vmem>>, %arg4: memref<32x96xbf16, #tpu.memory_space<vmem>>, %arg5: memref<1x96xf32, #tpu.memory_space<vmem>>, %arg6: memref<48x96xbf16, #tpu.memory_space<vmem>>, %arg7: memref<48x96xf32, #tpu.memory_space<vmem>>) attributes {dimension_semantics = [#tpu.dimension_semantics<parallel>, #tpu.dimension_semantics<parallel>, #tpu.dimension_semantics<arbitrary>], iteration_bounds = array<i64: 1, 1, 1>, scalar_prefetch = 0 : i64, scratch_operands = 1 : i64, tpu.core_type = #tpu.core_type<tc>, window_params = [{transform_indices = @transform_0, window_bounds = array<i64: 48, 32>}, {transform_indices = @transform_1, window_bounds = array<i64: 32, 96>}, {transform_indices = @transform_2, window_bounds = array<i64: 1, 96>}, {transform_indices = @transform_3, window_bounds = array<i64: 48, 96>}]} {
    %c0_i32 = arith.constant 0 : i32
    %0 = arith.cmpi eq, %arg2, %c0_i32 : i32
    %1 = arith.extui %0 : i1 to i32
    %c0_i32_0 = arith.constant 0 : i32
    %2 = arith.cmpi ne, %1, %c0_i32_0 : i32
    scf.if %2 {
      %cst_10 = arith.constant 0.000000e+00 : f32
      %12 = vector.broadcast %cst_10 : f32 to vector<48x96xf32>
      %c0_11 = arith.constant 0 : index
      %c0_12 = arith.constant 0 : index
      %13 = vector.load %arg7[%c0_11, %c0_12] : memref<48x96xf32, #tpu.memory_space<vmem>>, vector<48x96xf32>
      tpu.vector_store %arg7[%c0_11, %c0_12], %12 {strides = array<i32>} : memref<48x96xf32, #tpu.memory_space<vmem>>, vector<48x96xf32>,
    } else {
    }
    %c0 = arith.constant 0 : index
    %c0_1 = arith.constant 0 : index
    %3 = vector.load %arg7[%c0, %c0_1] : memref<48x96xf32, #tpu.memory_space<vmem>>, vector<48x96xf32>
    %c0_2 = arith.constant 0 : index
    %c0_3 = arith.constant 0 : index
    %4 = vector.load %arg3[%c0_2, %c0_3] : memref<48x32xbf16, #tpu.memory_space<vmem>>, vector<48x32xbf16>
    %c0_4 = arith.constant 0 : index
    %c0_5 = arith.constant 0 : index
    %5 = vector.load %arg4[%c0_4, %c0_5] : memref<32x96xbf16, #tpu.memory_space<vmem>>, vector<32x96xbf16>
    %cst = arith.constant dense<0.000000e+00> : vector<48x96xf32>
    %6 = tpu.matmul %4, %5, %cst {dimension_numbers = #tpu.dot_dimension_numbers<[1], [0], [0], [1], [0, 0, 1, 1], [], []>} : vector<48x32xbf16>, vector<32x96xbf16>, vector<48x96xf32> -> vector<48x96xf32>
    %7 = arith.addf %3, %6 : vector<48x96xf32>
    %c0_6 = arith.constant 0 : index
    %c0_7 = arith.constant 0 : index
    %8 = vector.load %arg7[%c0_6, %c0_7] : memref<48x96xf32, #tpu.memory_space<vmem>>, vector<48x96xf32>
    tpu.vector_store %arg7[%c0_6, %c0_7], %7 {strides = array<i32>} : memref<48x96xf32, #tpu.memory_space<vmem>>, vector<48x96xf32>,
    %c0_i32_8 = arith.constant 0 : i32
    %9 = arith.cmpi eq, %arg2, %c0_i32_8 : i32
    %10 = arith.extui %9 : i1 to i32
    %c0_i32_9 = arith.constant 0 : i32
    %11 = arith.cmpi ne, %10, %c0_i32_9 : i32
    scf.if %11 {
      %c0_10 = arith.constant 0 : index
      %c0_11 = arith.constant 0 : index
      %12 = vector.load %arg7[%c0_10, %c0_11] : memref<48x96xf32, #tpu.memory_space<vmem>>, vector<48x96xf32>
      %c0_12 = arith.constant 0 : index
      %c0_13 = arith.constant 0 : index
      %13 = vector.load %arg5[%c0_12, %c0_13] : memref<1x96xf32, #tpu.memory_space<vmem>>, vector<1x96xf32>
      %14 = vector.broadcast %13 : vector<1x96xf32> to vector<48x96xf32>
      %15 = arith.addf %12, %14 : vector<48x96xf32>
      %16 = arith.truncf %15 : vector<48x96xf32> to vector<48x96xbf16>
      %c0_14 = arith.constant 0 : index
      %c0_15 = arith.constant 0 : index
      %17 = vector.load %arg6[%c0_14, %c0_15] : memref<48x96xbf16, #tpu.memory_space<vmem>>, vector<48x96xbf16>
      tpu.vector_store %arg6[%c0_14, %c0_15], %16 {strides = array<i32>} : memref<48x96xbf16, #tpu.memory_space<vmem>>, vector<48x96xbf16>,
    } else {
    }
    return
  }
  func.func @transform_0(%arg0: i32, %arg1: i32, %arg2: i32) -> (i32, i32) {
    %c0_i32 = arith.constant 0 : i32
    return %arg0, %arg2 : i32, i32
  }
  func.func @transform_1(%arg0: i32, %arg1: i32, %arg2: i32) -> (i32, i32) {
    %c0_i32 = arith.constant 0 : i32
    return %arg2, %arg1 : i32, i32
  }
  func.func @transform_2(%arg0: i32, %arg1: i32, %arg2: i32) -> (i32, i32) {
    %c0_i32 = arith.constant 0 : i32
    %c0_i32_0 = arith.constant 0 : i32
    return %c0_i32, %arg1 : i32, i32
  }
  func.func @transform_3(%arg0: i32, %arg1: i32, %arg2: i32) -> (i32, i32) {
    %c0_i32 = arith.constant 0 : i32
    return %arg0, %arg1 : i32, i32
  }
}

module attributes {stable_mosaic.version = 11 : i64} {
  func.func @_attention_kernel(%arg0: i32, %arg1: memref<1x24x96xbf16, #tpu.memory_space<vmem>>, %arg2: memref<1x24x32xbf16, #tpu.memory_space<vmem>>) attributes {dimension_semantics = [#tpu.dimension_semantics<parallel>], iteration_bounds = array<i64: 2>, scalar_prefetch = 0 : i64, scratch_operands = 0 : i64, tpu.core_type = #tpu.core_type<tc>, window_params = [{transform_indices = @transform_0, window_bounds = array<i64: 1, 24, 96>}, {transform_indices = @transform_1, window_bounds = array<i64: 1, 24, 32>}]} {
    %c0 = arith.constant 0 : index
    %c0_0 = arith.constant 0 : index
    %c0_1 = arith.constant 0 : index
    %0 = vector.load %arg1[%c0, %c0_0, %c0_1] : memref<1x24x96xbf16, #tpu.memory_space<vmem>>, vector<1x24x96xbf16>
    %1 = vector.shape_cast %0 : vector<1x24x96xbf16> to vector<24x96xbf16>
    %2 = vector.extract_strided_slice %1 {offsets = [0, 0], sizes = [24, 32], strides = [1, 1]} : vector<24x96xbf16> to vector<24x32xbf16>
    %3 = vector.extract_strided_slice %1 {offsets = [0, 32], sizes = [24, 32], strides = [1, 1]} : vector<24x96xbf16> to vector<24x32xbf16>
    %4 = vector.extract_strided_slice %1 {offsets = [0, 64], sizes = [24, 32], strides = [1, 1]} : vector<24x96xbf16> to vector<24x32xbf16>
    %cst = arith.constant 8.000000e+00 : f32
    %5 = math.sqrt %cst : f32
    %cst_2 = arith.constant 1.000000e+00 : f32
    %6 = arith.divf %cst_2, %5 : f32
    %7 = tpu.iota {dimensions = array<i32: 1>} : vector<24x24xi32>
    %c17_i32 = arith.constant 17 : i32
    %8 = vector.broadcast %c17_i32 : i32 to vector<24x24xi32>
    %9 = arith.cmpi slt, %7, %8 : vector<24x24xi32>
    %cst_3 = arith.constant 0.000000e+00 : f32
    %cst_4 = arith.constant -1.000000e+30 : f32
    %10 = vector.broadcast %cst_3 : f32 to vector<24x24xf32>
    %11 = vector.broadcast %cst_4 : f32 to vector<24x24xf32>
    %12 = arith.select %9, %10, %11 : vector<24x24xi1>, vector<24x24xf32>
    %13 = vector.extract_strided_slice %2 {offsets = [0, 0], sizes = [24, 8], strides = [1, 1]} : vector<24x32xbf16> to vector<24x8xbf16>
    %14 = vector.extract_strided_slice %3 {offsets = [0, 0], sizes = [24, 8], strides = [1, 1]} : vector<24x32xbf16> to vector<24x8xbf16>
    %15 = vector.extract_strided_slice %4 {offsets = [0, 0], sizes = [24, 8], strides = [1, 1]} : vector<24x32xbf16> to vector<24x8xbf16>
    %cst_5 = arith.constant dense<0.000000e+00> : vector<24x24xf32>
    %16 = tpu.matmul %13, %14, %cst_5 {dimension_numbers = #tpu.dot_dimension_numbers<[1], [1], [0], [0], [0, 0, 1, 0], [], []>} : vector<24x8xbf16>, vector<24x8xbf16>, vector<24x24xf32> -> vector<24x24xf32>
    %17 = vector.broadcast %6 : f32 to vector<24x24xf32>
    %18 = arith.mulf %16, %17 : vector<24x24xf32>
    %19 = arith.addf %18, %12 : vector<24x24xf32>
    %cst_6 = arith.constant dense<0xFF800000> : vector<24xf32>
    %20 = vector.multi_reduction <maximumf>, %19, %cst_6 [1] : vector<24x24xf32> to vector<24xf32>
    %21 = vector.shape_cast %20 : vector<24xf32> to vector<24x1xf32>
    %22 = vector.broadcast %21 : vector<24x1xf32> to vector<24x24xf32>
    %23 = arith.subf %19, %22 : vector<24x24xf32>
    %24 = math.exp %23 : vector<24x24xf32>
    %cst_7 = arith.constant dense<0.000000e+00> : vector<24xf32>
    %25 = vector.multi_reduction <add>, %24, %cst_7 [1] : vector<24x24xf32> to vector<24xf32>
    %26 = vector.shape_cast %25 : vector<24xf32> to vector<24x1xf32>
    %27 = arith.truncf %24 : vector<24x24xf32> to vector<24x24xbf16>
    %cst_8 = arith.constant dense<0.000000e+00> : vector<24x8xf32>
    %28 = tpu.matmul %27, %15, %cst_8 {dimension_numbers = #tpu.dot_dimension_numbers<[1], [0], [0], [1], [0, 0, 1, 1], [], []>} : vector<24x24xbf16>, vector<24x8xbf16>, vector<24x8xf32> -> vector<24x8xf32>
    %29 = tpu.reciprocal %26 {approx = true} : vector<24x1xf32> -> vector<24x1xf32>
    %30 = vector.broadcast %29 : vector<24x1xf32> to vector<24x8xf32>
    %31 = arith.mulf %28, %30 : vector<24x8xf32>
    %32 = vector.extract_strided_slice %2 {offsets = [0, 8], sizes = [24, 8], strides = [1, 1]} : vector<24x32xbf16> to vector<24x8xbf16>
    %33 = vector.extract_strided_slice %3 {offsets = [0, 8], sizes = [24, 8], strides = [1, 1]} : vector<24x32xbf16> to vector<24x8xbf16>
    %34 = vector.extract_strided_slice %4 {offsets = [0, 8], sizes = [24, 8], strides = [1, 1]} : vector<24x32xbf16> to vector<24x8xbf16>
    %cst_9 = arith.constant dense<0.000000e+00> : vector<24x24xf32>
    %35 = tpu.matmul %32, %33, %cst_9 {dimension_numbers = #tpu.dot_dimension_numbers<[1], [1], [0], [0], [0, 0, 1, 0], [], []>} : vector<24x8xbf16>, vector<24x8xbf16>, vector<24x24xf32> -> vector<24x24xf32>
    %36 = vector.broadcast %6 : f32 to vector<24x24xf32>
    %37 = arith.mulf %35, %36 : vector<24x24xf32>
    %38 = arith.addf %37, %12 : vector<24x24xf32>
    %cst_10 = arith.constant dense<0xFF800000> : vector<24xf32>
    %39 = vector.multi_reduction <maximumf>, %38, %cst_10 [1] : vector<24x24xf32> to vector<24xf32>
    %40 = vector.shape_cast %39 : vector<24xf32> to vector<24x1xf32>
    %41 = vector.broadcast %40 : vector<24x1xf32> to vector<24x24xf32>
    %42 = arith.subf %38, %41 : vector<24x24xf32>
    %43 = math.exp %42 : vector<24x24xf32>
    %cst_11 = arith.constant dense<0.000000e+00> : vector<24xf32>
    %44 = vector.multi_reduction <add>, %43, %cst_11 [1] : vector<24x24xf32> to vector<24xf32>
    %45 = vector.shape_cast %44 : vector<24xf32> to vector<24x1xf32>
    %46 = arith.truncf %43 : vector<24x24xf32> to vector<24x24xbf16>
    %cst_12 = arith.constant dense<0.000000e+00> : vector<24x8xf32>
    %47 = tpu.matmul %46, %34, %cst_12 {dimension_numbers = #tpu.dot_dimension_numbers<[1], [0], [0], [1], [0, 0, 1, 1], [], []>} : vector<24x24xbf16>, vector<24x8xbf16>, vector<24x8xf32> -> vector<24x8xf32>
    %48 = tpu.reciprocal %45 {approx = true} : vector<24x1xf32> -> vector<24x1xf32>
    %49 = vector.broadcast %48 : vector<24x1xf32> to vector<24x8xf32>
    %50 = arith.mulf %47, %49 : vector<24x8xf32>
    %51 = vector.extract_strided_slice %2 {offsets = [0, 16], sizes = [24, 8], strides = [1, 1]} : vector<24x32xbf16> to vector<24x8xbf16>
    %52 = vector.extract_strided_slice %3 {offsets = [0, 16], sizes = [24, 8], strides = [1, 1]} : vector<24x32xbf16> to vector<24x8xbf16>
    %53 = vector.extract_strided_slice %4 {offsets = [0, 16], sizes = [24, 8], strides = [1, 1]} : vector<24x32xbf16> to vector<24x8xbf16>
    %cst_13 = arith.constant dense<0.000000e+00> : vector<24x24xf32>
    %54 = tpu.matmul %51, %52, %cst_13 {dimension_numbers = #tpu.dot_dimension_numbers<[1], [1], [0], [0], [0, 0, 1, 0], [], []>} : vector<24x8xbf16>, vector<24x8xbf16>, vector<24x24xf32> -> vector<24x24xf32>
    %55 = vector.broadcast %6 : f32 to vector<24x24xf32>
    %56 = arith.mulf %54, %55 : vector<24x24xf32>
    %57 = arith.addf %56, %12 : vector<24x24xf32>
    %cst_14 = arith.constant dense<0xFF800000> : vector<24xf32>
    %58 = vector.multi_reduction <maximumf>, %57, %cst_14 [1] : vector<24x24xf32> to vector<24xf32>
    %59 = vector.shape_cast %58 : vector<24xf32> to vector<24x1xf32>
    %60 = vector.broadcast %59 : vector<24x1xf32> to vector<24x24xf32>
    %61 = arith.subf %57, %60 : vector<24x24xf32>
    %62 = math.exp %61 : vector<24x24xf32>
    %cst_15 = arith.constant dense<0.000000e+00> : vector<24xf32>
    %63 = vector.multi_reduction <add>, %62, %cst_15 [1] : vector<24x24xf32> to vector<24xf32>
    %64 = vector.shape_cast %63 : vector<24xf32> to vector<24x1xf32>
    %65 = arith.truncf %62 : vector<24x24xf32> to vector<24x24xbf16>
    %cst_16 = arith.constant dense<0.000000e+00> : vector<24x8xf32>
    %66 = tpu.matmul %65, %53, %cst_16 {dimension_numbers = #tpu.dot_dimension_numbers<[1], [0], [0], [1], [0, 0, 1, 1], [], []>} : vector<24x24xbf16>, vector<24x8xbf16>, vector<24x8xf32> -> vector<24x8xf32>
    %67 = tpu.reciprocal %64 {approx = true} : vector<24x1xf32> -> vector<24x1xf32>
    %68 = vector.broadcast %67 : vector<24x1xf32> to vector<24x8xf32>
    %69 = arith.mulf %66, %68 : vector<24x8xf32>
    %70 = vector.extract_strided_slice %2 {offsets = [0, 24], sizes = [24, 8], strides = [1, 1]} : vector<24x32xbf16> to vector<24x8xbf16>
    %71 = vector.extract_strided_slice %3 {offsets = [0, 24], sizes = [24, 8], strides = [1, 1]} : vector<24x32xbf16> to vector<24x8xbf16>
    %72 = vector.extract_strided_slice %4 {offsets = [0, 24], sizes = [24, 8], strides = [1, 1]} : vector<24x32xbf16> to vector<24x8xbf16>
    %cst_17 = arith.constant dense<0.000000e+00> : vector<24x24xf32>
    %73 = tpu.matmul %70, %71, %cst_17 {dimension_numbers = #tpu.dot_dimension_numbers<[1], [1], [0], [0], [0, 0, 1, 0], [], []>} : vector<24x8xbf16>, vector<24x8xbf16>, vector<24x24xf32> -> vector<24x24xf32>
    %74 = vector.broadcast %6 : f32 to vector<24x24xf32>
    %75 = arith.mulf %73, %74 : vector<24x24xf32>
    %76 = arith.addf %75, %12 : vector<24x24xf32>
    %cst_18 = arith.constant dense<0xFF800000> : vector<24xf32>
    %77 = vector.multi_reduction <maximumf>, %76, %cst_18 [1] : vector<24x24xf32> to vector<24xf32>
    %78 = vector.shape_cast %77 : vector<24xf32> to vector<24x1xf32>
    %79 = vector.broadcast %78 : vector<24x1xf32> to vector<24x24xf32>
    %80 = arith.subf %76, %79 : vector<24x24xf32>
    %81 = math.exp %80 : vector<24x24xf32>
    %cst_19 = arith.constant dense<0.000000e+00> : vector<24xf32>
    %82 = vector.multi_reduction <add>, %81, %cst_19 [1] : vector<24x24xf32> to vector<24xf32>
    %83 = vector.shape_cast %82 : vector<24xf32> to vector<24x1xf32>
    %84 = arith.truncf %81 : vector<24x24xf32> to vector<24x24xbf16>
    %cst_20 = arith.constant dense<0.000000e+00> : vector<24x8xf32>
    %85 = tpu.matmul %84, %72, %cst_20 {dimension_numbers = #tpu.dot_dimension_numbers<[1], [0], [0], [1], [0, 0, 1, 1], [], []>} : vector<24x24xbf16>, vector<24x8xbf16>, vector<24x8xf32> -> vector<24x8xf32>
    %86 = tpu.reciprocal %83 {approx = true} : vector<24x1xf32> -> vector<24x1xf32>
    %87 = vector.broadcast %86 : vector<24x1xf32> to vector<24x8xf32>
    %88 = arith.mulf %85, %87 : vector<24x8xf32>
    %89 = tpu.concatenate %31, %50, %69, %88 in 1 : vector<24x8xf32>, vector<24x8xf32>, vector<24x8xf32>, vector<24x8xf32> -> vector<24x32xf32>
    %90 = arith.truncf %89 : vector<24x32xf32> to vector<24x32xbf16>
    %c0_21 = arith.constant 0 : index
    %c0_22 = arith.constant 0 : index
    %c0_23 = arith.constant 0 : index
    %91 = vector.load %arg2[%c0_21, %c0_22, %c0_23] : memref<1x24x32xbf16, #tpu.memory_space<vmem>>, vector<1x24x32xbf16>
    %92 = vector.shape_cast %91 : vector<1x24x32xbf16> to vector<24x32xbf16>
    %93 = vector.shape_cast %90 : vector<24x32xbf16> to vector<1x24x32xbf16>
    tpu.vector_store %arg2[%c0_21, %c0_22, %c0_23], %93 {strides = array<i32>} : memref<1x24x32xbf16, #tpu.memory_space<vmem>>, vector<1x24x32xbf16>,
    return
  }
  func.func @transform_0(%arg0: i32) -> (i32, i32, i32) {
    %c0_i32 = arith.constant 0 : i32
    %c0_i32_0 = arith.constant 0 : i32
    %c0_i32_1 = arith.constant 0 : i32
    return %arg0, %c0_i32, %c0_i32_0 : i32, i32, i32
  }
  func.func @transform_1(%arg0: i32) -> (i32, i32, i32) {
    %c0_i32 = arith.constant 0 : i32
    %c0_i32_0 = arith.constant 0 : i32
    %c0_i32_1 = arith.constant 0 : i32
    return %arg0, %c0_i32, %c0_i32_0 : i32, i32, i32
  }
}

module attributes {stable_mosaic.version = 11 : i64} {
  func.func @_linear_add_ln_kernel(%arg0: i32, %arg1: i32, %arg2: memref<48x32xbf16, #tpu.memory_space<vmem>>, %arg3: memref<32x32xbf16, #tpu.memory_space<vmem>>, %arg4: memref<1x32xf32, #tpu.memory_space<vmem>>, %arg5: memref<48x32xbf16, #tpu.memory_space<vmem>>, %arg6: memref<1x32xf32, #tpu.memory_space<vmem>>, %arg7: memref<1x32xf32, #tpu.memory_space<vmem>>, %arg8: memref<48x32xbf16, #tpu.memory_space<vmem>>, %arg9: memref<48x32xf32, #tpu.memory_space<vmem>>) attributes {dimension_semantics = [#tpu.dimension_semantics<parallel>, #tpu.dimension_semantics<arbitrary>], iteration_bounds = array<i64: 1, 1>, scalar_prefetch = 0 : i64, scratch_operands = 1 : i64, tpu.core_type = #tpu.core_type<tc>, window_params = [{transform_indices = @transform_0, window_bounds = array<i64: 48, 32>}, {transform_indices = @transform_1, window_bounds = array<i64: 32, 32>}, {pipeline_mode = #tpu.pipeline_mode<synchronous>, transform_indices = @transform_2, window_bounds = array<i64: 1, 32>}, {transform_indices = @transform_3, window_bounds = array<i64: 48, 32>}, {pipeline_mode = #tpu.pipeline_mode<synchronous>, transform_indices = @transform_4, window_bounds = array<i64: 1, 32>}, {pipeline_mode = #tpu.pipeline_mode<synchronous>, transform_indices = @transform_5, window_bounds = array<i64: 1, 32>}, {transform_indices = @transform_6, window_bounds = array<i64: 48, 32>}]} {
    %c0_i32 = arith.constant 0 : i32
    %0 = arith.cmpi eq, %arg1, %c0_i32 : i32
    %1 = arith.extui %0 : i1 to i32
    %c0_i32_0 = arith.constant 0 : i32
    %2 = arith.cmpi ne, %1, %c0_i32_0 : i32
    scf.if %2 {
      %cst_10 = arith.constant 0.000000e+00 : f32
      %12 = vector.broadcast %cst_10 : f32 to vector<48x32xf32>
      %c0_11 = arith.constant 0 : index
      %c0_12 = arith.constant 0 : index
      %13 = vector.load %arg9[%c0_11, %c0_12] : memref<48x32xf32, #tpu.memory_space<vmem>>, vector<48x32xf32>
      tpu.vector_store %arg9[%c0_11, %c0_12], %12 {strides = array<i32>} : memref<48x32xf32, #tpu.memory_space<vmem>>, vector<48x32xf32>,
    } else {
    }
    %c0 = arith.constant 0 : index
    %c0_1 = arith.constant 0 : index
    %3 = vector.load %arg9[%c0, %c0_1] : memref<48x32xf32, #tpu.memory_space<vmem>>, vector<48x32xf32>
    %c0_2 = arith.constant 0 : index
    %c0_3 = arith.constant 0 : index
    %4 = vector.load %arg2[%c0_2, %c0_3] : memref<48x32xbf16, #tpu.memory_space<vmem>>, vector<48x32xbf16>
    %c0_4 = arith.constant 0 : index
    %c0_5 = arith.constant 0 : index
    %5 = vector.load %arg3[%c0_4, %c0_5] : memref<32x32xbf16, #tpu.memory_space<vmem>>, vector<32x32xbf16>
    %cst = arith.constant dense<0.000000e+00> : vector<48x32xf32>
    %6 = tpu.matmul %4, %5, %cst {dimension_numbers = #tpu.dot_dimension_numbers<[1], [0], [0], [1], [0, 0, 1, 1], [], []>} : vector<48x32xbf16>, vector<32x32xbf16>, vector<48x32xf32> -> vector<48x32xf32>
    %7 = arith.addf %3, %6 : vector<48x32xf32>
    %c0_6 = arith.constant 0 : index
    %c0_7 = arith.constant 0 : index
    %8 = vector.load %arg9[%c0_6, %c0_7] : memref<48x32xf32, #tpu.memory_space<vmem>>, vector<48x32xf32>
    tpu.vector_store %arg9[%c0_6, %c0_7], %7 {strides = array<i32>} : memref<48x32xf32, #tpu.memory_space<vmem>>, vector<48x32xf32>,
    %c0_i32_8 = arith.constant 0 : i32
    %9 = arith.cmpi eq, %arg1, %c0_i32_8 : i32
    %10 = arith.extui %9 : i1 to i32
    %c0_i32_9 = arith.constant 0 : i32
    %11 = arith.cmpi ne, %10, %c0_i32_9 : i32
    scf.if %11 {
      %c0_10 = arith.constant 0 : index
      %c0_11 = arith.constant 0 : index
      %12 = vector.load %arg9[%c0_10, %c0_11] : memref<48x32xf32, #tpu.memory_space<vmem>>, vector<48x32xf32>
      %c0_12 = arith.constant 0 : index
      %c0_13 = arith.constant 0 : index
      %13 = vector.load %arg4[%c0_12, %c0_13] : memref<1x32xf32, #tpu.memory_space<vmem>>, vector<1x32xf32>
      %14 = vector.broadcast %13 : vector<1x32xf32> to vector<48x32xf32>
      %15 = arith.addf %12, %14 : vector<48x32xf32>
      %c0_14 = arith.constant 0 : index
      %c0_15 = arith.constant 0 : index
      %16 = vector.load %arg5[%c0_14, %c0_15] : memref<48x32xbf16, #tpu.memory_space<vmem>>, vector<48x32xbf16>
      %17 = arith.extf %16 : vector<48x32xbf16> to vector<48x32xf32>
      %18 = arith.addf %15, %17 : vector<48x32xf32>
      %cst_16 = arith.constant dense<0.000000e+00> : vector<48xf32>
      %19 = vector.multi_reduction <add>, %18, %cst_16 [1] : vector<48x32xf32> to vector<48xf32>
      %20 = vector.shape_cast %19 : vector<48xf32> to vector<48x1xf32>
      %cst_17 = arith.constant 3.200000e+01 : f32
      %21 = vector.broadcast %cst_17 : f32 to vector<48x1xf32>
      %22 = arith.divf %20, %21 : vector<48x1xf32>
      %23 = vector.broadcast %22 : vector<48x1xf32> to vector<48x32xf32>
      %24 = arith.subf %18, %23 : vector<48x32xf32>
      %25 = arith.mulf %24, %24 : vector<48x32xf32>
      %cst_18 = arith.constant dense<0.000000e+00> : vector<48xf32>
      %26 = vector.multi_reduction <add>, %25, %cst_18 [1] : vector<48x32xf32> to vector<48xf32>
      %27 = vector.shape_cast %26 : vector<48xf32> to vector<48x1xf32>
      %cst_19 = arith.constant 3.200000e+01 : f32
      %28 = vector.broadcast %cst_19 : f32 to vector<48x1xf32>
      %29 = arith.divf %27, %28 : vector<48x1xf32>
      %cst_20 = arith.constant 9.99999974E-6 : f32
      %30 = vector.broadcast %cst_20 : f32 to vector<48x1xf32>
      %31 = arith.addf %29, %30 : vector<48x1xf32>
      %32 = math.rsqrt %31 : vector<48x1xf32>
      %33 = vector.broadcast %32 : vector<48x1xf32> to vector<48x32xf32>
      %34 = arith.mulf %24, %33 : vector<48x32xf32>
      %c0_21 = arith.constant 0 : index
      %c0_22 = arith.constant 0 : index
      %35 = vector.load %arg6[%c0_21, %c0_22] : memref<1x32xf32, #tpu.memory_space<vmem>>, vector<1x32xf32>
      %36 = vector.broadcast %35 : vector<1x32xf32> to vector<48x32xf32>
      %37 = arith.mulf %34, %36 : vector<48x32xf32>
      %c0_23 = arith.constant 0 : index
      %c0_24 = arith.constant 0 : index
      %38 = vector.load %arg7[%c0_23, %c0_24] : memref<1x32xf32, #tpu.memory_space<vmem>>, vector<1x32xf32>
      %39 = vector.broadcast %38 : vector<1x32xf32> to vector<48x32xf32>
      %40 = arith.addf %37, %39 : vector<48x32xf32>
      %41 = arith.truncf %40 : vector<48x32xf32> to vector<48x32xbf16>
      %c0_25 = arith.constant 0 : index
      %c0_26 = arith.constant 0 : index
      %42 = vector.load %arg8[%c0_25, %c0_26] : memref<48x32xbf16, #tpu.memory_space<vmem>>, vector<48x32xbf16>
      tpu.vector_store %arg8[%c0_25, %c0_26], %41 {strides = array<i32>} : memref<48x32xbf16, #tpu.memory_space<vmem>>, vector<48x32xbf16>,
    } else {
    }
    return
  }
  func.func @transform_0(%arg0: i32, %arg1: i32) -> (i32, i32) {
    %c0_i32 = arith.constant 0 : i32
    return %arg0, %arg1 : i32, i32
  }
  func.func @transform_1(%arg0: i32, %arg1: i32) -> (i32, i32) {
    %c0_i32 = arith.constant 0 : i32
    %c0_i32_0 = arith.constant 0 : i32
    return %arg1, %c0_i32 : i32, i32
  }
  func.func @transform_2(%arg0: i32, %arg1: i32) -> (i32, i32) {
    %c0_i32 = arith.constant 0 : i32
    %c0_i32_0 = arith.constant 0 : i32
    %c0_i32_1 = arith.constant 0 : i32
    return %c0_i32, %c0_i32_0 : i32, i32
  }
  func.func @transform_3(%arg0: i32, %arg1: i32) -> (i32, i32) {
    %c0_i32 = arith.constant 0 : i32
    %c0_i32_0 = arith.constant 0 : i32
    return %arg0, %c0_i32 : i32, i32
  }
  func.func @transform_4(%arg0: i32, %arg1: i32) -> (i32, i32) {
    %c0_i32 = arith.constant 0 : i32
    %c0_i32_0 = arith.constant 0 : i32
    %c0_i32_1 = arith.constant 0 : i32
    return %c0_i32, %c0_i32_0 : i32, i32
  }
  func.func @transform_5(%arg0: i32, %arg1: i32) -> (i32, i32) {
    %c0_i32 = arith.constant 0 : i32
    %c0_i32_0 = arith.constant 0 : i32
    %c0_i32_1 = arith.constant 0 : i32
    return %c0_i32, %c0_i32_0 : i32, i32
  }
  func.func @transform_6(%arg0: i32, %arg1: i32) -> (i32, i32) {
    %c0_i32 = arith.constant 0 : i32
    %c0_i32_0 = arith.constant 0 : i32
    return %arg0, %c0_i32 : i32, i32
  }
}

module attributes {stable_mosaic.version = 11 : i64} {
  func.func @_linear_kernel(%arg0: i32, %arg1: i32, %arg2: i32, %arg3: memref<48x32xbf16, #tpu.memory_space<vmem>>, %arg4: memref<32x128xbf16, #tpu.memory_space<vmem>>, %arg5: memref<1x128xf32, #tpu.memory_space<vmem>>, %arg6: memref<48x128xbf16, #tpu.memory_space<vmem>>, %arg7: memref<48x128xf32, #tpu.memory_space<vmem>>) attributes {dimension_semantics = [#tpu.dimension_semantics<parallel>, #tpu.dimension_semantics<parallel>, #tpu.dimension_semantics<arbitrary>], iteration_bounds = array<i64: 1, 1, 1>, scalar_prefetch = 0 : i64, scratch_operands = 1 : i64, tpu.core_type = #tpu.core_type<tc>, window_params = [{transform_indices = @transform_0, window_bounds = array<i64: 48, 32>}, {transform_indices = @transform_1, window_bounds = array<i64: 32, 128>}, {transform_indices = @transform_2, window_bounds = array<i64: 1, 128>}, {transform_indices = @transform_3, window_bounds = array<i64: 48, 128>}]} {
    %c0_i32 = arith.constant 0 : i32
    %0 = arith.cmpi eq, %arg2, %c0_i32 : i32
    %1 = arith.extui %0 : i1 to i32
    %c0_i32_0 = arith.constant 0 : i32
    %2 = arith.cmpi ne, %1, %c0_i32_0 : i32
    scf.if %2 {
      %cst_10 = arith.constant 0.000000e+00 : f32
      %12 = vector.broadcast %cst_10 : f32 to vector<48x128xf32>
      %c0_11 = arith.constant 0 : index
      %c0_12 = arith.constant 0 : index
      %13 = vector.load %arg7[%c0_11, %c0_12] : memref<48x128xf32, #tpu.memory_space<vmem>>, vector<48x128xf32>
      tpu.vector_store %arg7[%c0_11, %c0_12], %12 {strides = array<i32>} : memref<48x128xf32, #tpu.memory_space<vmem>>, vector<48x128xf32>,
    } else {
    }
    %c0 = arith.constant 0 : index
    %c0_1 = arith.constant 0 : index
    %3 = vector.load %arg7[%c0, %c0_1] : memref<48x128xf32, #tpu.memory_space<vmem>>, vector<48x128xf32>
    %c0_2 = arith.constant 0 : index
    %c0_3 = arith.constant 0 : index
    %4 = vector.load %arg3[%c0_2, %c0_3] : memref<48x32xbf16, #tpu.memory_space<vmem>>, vector<48x32xbf16>
    %c0_4 = arith.constant 0 : index
    %c0_5 = arith.constant 0 : index
    %5 = vector.load %arg4[%c0_4, %c0_5] : memref<32x128xbf16, #tpu.memory_space<vmem>>, vector<32x128xbf16>
    %cst = arith.constant dense<0.000000e+00> : vector<48x128xf32>
    %6 = tpu.matmul %4, %5, %cst {dimension_numbers = #tpu.dot_dimension_numbers<[1], [0], [0], [1], [0, 0, 1, 1], [], []>} : vector<48x32xbf16>, vector<32x128xbf16>, vector<48x128xf32> -> vector<48x128xf32>
    %7 = arith.addf %3, %6 : vector<48x128xf32>
    %c0_6 = arith.constant 0 : index
    %c0_7 = arith.constant 0 : index
    %8 = vector.load %arg7[%c0_6, %c0_7] : memref<48x128xf32, #tpu.memory_space<vmem>>, vector<48x128xf32>
    tpu.vector_store %arg7[%c0_6, %c0_7], %7 {strides = array<i32>} : memref<48x128xf32, #tpu.memory_space<vmem>>, vector<48x128xf32>,
    %c0_i32_8 = arith.constant 0 : i32
    %9 = arith.cmpi eq, %arg2, %c0_i32_8 : i32
    %10 = arith.extui %9 : i1 to i32
    %c0_i32_9 = arith.constant 0 : i32
    %11 = arith.cmpi ne, %10, %c0_i32_9 : i32
    scf.if %11 {
      %c0_10 = arith.constant 0 : index
      %c0_11 = arith.constant 0 : index
      %12 = vector.load %arg7[%c0_10, %c0_11] : memref<48x128xf32, #tpu.memory_space<vmem>>, vector<48x128xf32>
      %c0_12 = arith.constant 0 : index
      %c0_13 = arith.constant 0 : index
      %13 = vector.load %arg5[%c0_12, %c0_13] : memref<1x128xf32, #tpu.memory_space<vmem>>, vector<1x128xf32>
      %14 = vector.broadcast %13 : vector<1x128xf32> to vector<48x128xf32>
      %15 = arith.addf %12, %14 : vector<48x128xf32>
      %cst_14 = arith.constant 0.000000e+00 : f32
      %16 = vector.broadcast %cst_14 : f32 to vector<48x128xf32>
      %17 = arith.maximumf %15, %16 : vector<48x128xf32>
      %18 = arith.truncf %17 : vector<48x128xf32> to vector<48x128xbf16>
      %c0_15 = arith.constant 0 : index
      %c0_16 = arith.constant 0 : index
      %19 = vector.load %arg6[%c0_15, %c0_16] : memref<48x128xbf16, #tpu.memory_space<vmem>>, vector<48x128xbf16>
      tpu.vector_store %arg6[%c0_15, %c0_16], %18 {strides = array<i32>} : memref<48x128xbf16, #tpu.memory_space<vmem>>, vector<48x128xbf16>,
    } else {
    }
    return
  }
  func.func @transform_0(%arg0: i32, %arg1: i32, %arg2: i32) -> (i32, i32) {
    %c0_i32 = arith.constant 0 : i32
    return %arg0, %arg2 : i32, i32
  }
  func.func @transform_1(%arg0: i32, %arg1: i32, %arg2: i32) -> (i32, i32) {
    %c0_i32 = arith.constant 0 : i32
    return %arg2, %arg1 : i32, i32
  }
  func.func @transform_2(%arg0: i32, %arg1: i32, %arg2: i32) -> (i32, i32) {
    %c0_i32 = arith.constant 0 : i32
    %c0_i32_0 = arith.constant 0 : i32
    return %c0_i32, %arg1 : i32, i32
  }
  func.func @transform_3(%arg0: i32, %arg1: i32, %arg2: i32) -> (i32, i32) {
    %c0_i32 = arith.constant 0 : i32
    return %arg0, %arg1 : i32, i32
  }
}

module attributes {stable_mosaic.version = 11 : i64} {
  func.func @_linear_add_ln_kernel(%arg0: i32, %arg1: i32, %arg2: memref<48x128xbf16, #tpu.memory_space<vmem>>, %arg3: memref<128x32xbf16, #tpu.memory_space<vmem>>, %arg4: memref<1x32xf32, #tpu.memory_space<vmem>>, %arg5: memref<48x32xbf16, #tpu.memory_space<vmem>>, %arg6: memref<1x32xf32, #tpu.memory_space<vmem>>, %arg7: memref<1x32xf32, #tpu.memory_space<vmem>>, %arg8: memref<48x32xbf16, #tpu.memory_space<vmem>>, %arg9: memref<48x32xf32, #tpu.memory_space<vmem>>) attributes {dimension_semantics = [#tpu.dimension_semantics<parallel>, #tpu.dimension_semantics<arbitrary>], iteration_bounds = array<i64: 1, 1>, scalar_prefetch = 0 : i64, scratch_operands = 1 : i64, tpu.core_type = #tpu.core_type<tc>, window_params = [{transform_indices = @transform_0, window_bounds = array<i64: 48, 128>}, {transform_indices = @transform_1, window_bounds = array<i64: 128, 32>}, {pipeline_mode = #tpu.pipeline_mode<synchronous>, transform_indices = @transform_2, window_bounds = array<i64: 1, 32>}, {transform_indices = @transform_3, window_bounds = array<i64: 48, 32>}, {pipeline_mode = #tpu.pipeline_mode<synchronous>, transform_indices = @transform_4, window_bounds = array<i64: 1, 32>}, {pipeline_mode = #tpu.pipeline_mode<synchronous>, transform_indices = @transform_5, window_bounds = array<i64: 1, 32>}, {transform_indices = @transform_6, window_bounds = array<i64: 48, 32>}]} {
    %c0_i32 = arith.constant 0 : i32
    %0 = arith.cmpi eq, %arg1, %c0_i32 : i32
    %1 = arith.extui %0 : i1 to i32
    %c0_i32_0 = arith.constant 0 : i32
    %2 = arith.cmpi ne, %1, %c0_i32_0 : i32
    scf.if %2 {
      %cst_10 = arith.constant 0.000000e+00 : f32
      %12 = vector.broadcast %cst_10 : f32 to vector<48x32xf32>
      %c0_11 = arith.constant 0 : index
      %c0_12 = arith.constant 0 : index
      %13 = vector.load %arg9[%c0_11, %c0_12] : memref<48x32xf32, #tpu.memory_space<vmem>>, vector<48x32xf32>
      tpu.vector_store %arg9[%c0_11, %c0_12], %12 {strides = array<i32>} : memref<48x32xf32, #tpu.memory_space<vmem>>, vector<48x32xf32>,
    } else {
    }
    %c0 = arith.constant 0 : index
    %c0_1 = arith.constant 0 : index
    %3 = vector.load %arg9[%c0, %c0_1] : memref<48x32xf32, #tpu.memory_space<vmem>>, vector<48x32xf32>
    %c0_2 = arith.constant 0 : index
    %c0_3 = arith.constant 0 : index
    %4 = vector.load %arg2[%c0_2, %c0_3] : memref<48x128xbf16, #tpu.memory_space<vmem>>, vector<48x128xbf16>
    %c0_4 = arith.constant 0 : index
    %c0_5 = arith.constant 0 : index
    %5 = vector.load %arg3[%c0_4, %c0_5] : memref<128x32xbf16, #tpu.memory_space<vmem>>, vector<128x32xbf16>
    %cst = arith.constant dense<0.000000e+00> : vector<48x32xf32>
    %6 = tpu.matmul %4, %5, %cst {dimension_numbers = #tpu.dot_dimension_numbers<[1], [0], [0], [1], [0, 0, 1, 1], [], []>} : vector<48x128xbf16>, vector<128x32xbf16>, vector<48x32xf32> -> vector<48x32xf32>
    %7 = arith.addf %3, %6 : vector<48x32xf32>
    %c0_6 = arith.constant 0 : index
    %c0_7 = arith.constant 0 : index
    %8 = vector.load %arg9[%c0_6, %c0_7] : memref<48x32xf32, #tpu.memory_space<vmem>>, vector<48x32xf32>
    tpu.vector_store %arg9[%c0_6, %c0_7], %7 {strides = array<i32>} : memref<48x32xf32, #tpu.memory_space<vmem>>, vector<48x32xf32>,
    %c0_i32_8 = arith.constant 0 : i32
    %9 = arith.cmpi eq, %arg1, %c0_i32_8 : i32
    %10 = arith.extui %9 : i1 to i32
    %c0_i32_9 = arith.constant 0 : i32
    %11 = arith.cmpi ne, %10, %c0_i32_9 : i32
    scf.if %11 {
      %c0_10 = arith.constant 0 : index
      %c0_11 = arith.constant 0 : index
      %12 = vector.load %arg9[%c0_10, %c0_11] : memref<48x32xf32, #tpu.memory_space<vmem>>, vector<48x32xf32>
      %c0_12 = arith.constant 0 : index
      %c0_13 = arith.constant 0 : index
      %13 = vector.load %arg4[%c0_12, %c0_13] : memref<1x32xf32, #tpu.memory_space<vmem>>, vector<1x32xf32>
      %14 = vector.broadcast %13 : vector<1x32xf32> to vector<48x32xf32>
      %15 = arith.addf %12, %14 : vector<48x32xf32>
      %c0_14 = arith.constant 0 : index
      %c0_15 = arith.constant 0 : index
      %16 = vector.load %arg5[%c0_14, %c0_15] : memref<48x32xbf16, #tpu.memory_space<vmem>>, vector<48x32xbf16>
      %17 = arith.extf %16 : vector<48x32xbf16> to vector<48x32xf32>
      %18 = arith.addf %15, %17 : vector<48x32xf32>
      %cst_16 = arith.constant dense<0.000000e+00> : vector<48xf32>
      %19 = vector.multi_reduction <add>, %18, %cst_16 [1] : vector<48x32xf32> to vector<48xf32>
      %20 = vector.shape_cast %19 : vector<48xf32> to vector<48x1xf32>
      %cst_17 = arith.constant 3.200000e+01 : f32
      %21 = vector.broadcast %cst_17 : f32 to vector<48x1xf32>
      %22 = arith.divf %20, %21 : vector<48x1xf32>
      %23 = vector.broadcast %22 : vector<48x1xf32> to vector<48x32xf32>
      %24 = arith.subf %18, %23 : vector<48x32xf32>
      %25 = arith.mulf %24, %24 : vector<48x32xf32>
      %cst_18 = arith.constant dense<0.000000e+00> : vector<48xf32>
      %26 = vector.multi_reduction <add>, %25, %cst_18 [1] : vector<48x32xf32> to vector<48xf32>
      %27 = vector.shape_cast %26 : vector<48xf32> to vector<48x1xf32>
      %cst_19 = arith.constant 3.200000e+01 : f32
      %28 = vector.broadcast %cst_19 : f32 to vector<48x1xf32>
      %29 = arith.divf %27, %28 : vector<48x1xf32>
      %cst_20 = arith.constant 9.99999974E-6 : f32
      %30 = vector.broadcast %cst_20 : f32 to vector<48x1xf32>
      %31 = arith.addf %29, %30 : vector<48x1xf32>
      %32 = math.rsqrt %31 : vector<48x1xf32>
      %33 = vector.broadcast %32 : vector<48x1xf32> to vector<48x32xf32>
      %34 = arith.mulf %24, %33 : vector<48x32xf32>
      %c0_21 = arith.constant 0 : index
      %c0_22 = arith.constant 0 : index
      %35 = vector.load %arg6[%c0_21, %c0_22] : memref<1x32xf32, #tpu.memory_space<vmem>>, vector<1x32xf32>
      %36 = vector.broadcast %35 : vector<1x32xf32> to vector<48x32xf32>
      %37 = arith.mulf %34, %36 : vector<48x32xf32>
      %c0_23 = arith.constant 0 : index
      %c0_24 = arith.constant 0 : index
      %38 = vector.load %arg7[%c0_23, %c0_24] : memref<1x32xf32, #tpu.memory_space<vmem>>, vector<1x32xf32>
      %39 = vector.broadcast %38 : vector<1x32xf32> to vector<48x32xf32>
      %40 = arith.addf %37, %39 : vector<48x32xf32>
      %41 = arith.truncf %40 : vector<48x32xf32> to vector<48x32xbf16>
      %c0_25 = arith.constant 0 : index
      %c0_26 = arith.constant 0 : index
      %42 = vector.load %arg8[%c0_25, %c0_26] : memref<48x32xbf16, #tpu.memory_space<vmem>>, vector<48x32xbf16>
      tpu.vector_store %arg8[%c0_25, %c0_26], %41 {strides = array<i32>} : memref<48x32xbf16, #tpu.memory_space<vmem>>, vector<48x32xbf16>,
    } else {
    }
    return
  }
  func.func @transform_0(%arg0: i32, %arg1: i32) -> (i32, i32) {
    %c0_i32 = arith.constant 0 : i32
    return %arg0, %arg1 : i32, i32
  }
  func.func @transform_1(%arg0: i32, %arg1: i32) -> (i32, i32) {
    %c0_i32 = arith.constant 0 : i32
    %c0_i32_0 = arith.constant 0 : i32
    return %arg1, %c0_i32 : i32, i32
  }
  func.func @transform_2(%arg0: i32, %arg1: i32) -> (i32, i32) {
    %c0_i32 = arith.constant 0 : i32
    %c0_i32_0 = arith.constant 0 : i32
    %c0_i32_1 = arith.constant 0 : i32
    return %c0_i32, %c0_i32_0 : i32, i32
  }
  func.func @transform_3(%arg0: i32, %arg1: i32) -> (i32, i32) {
    %c0_i32 = arith.constant 0 : i32
    %c0_i32_0 = arith.constant 0 : i32
    return %arg0, %c0_i32 : i32, i32
  }
  func.func @transform_4(%arg0: i32, %arg1: i32) -> (i32, i32) {
    %c0_i32 = arith.constant 0 : i32
    %c0_i32_0 = arith.constant 0 : i32
    %c0_i32_1 = arith.constant 0 : i32
    return %c0_i32, %c0_i32_0 : i32, i32
  }
  func.func @transform_5(%arg0: i32, %arg1: i32) -> (i32, i32) {
    %c0_i32 = arith.constant 0 : i32
    %c0_i32_0 = arith.constant 0 : i32
    %c0_i32_1 = arith.constant 0 : i32
    return %c0_i32, %c0_i32_0 : i32, i32
  }
  func.func @transform_6(%arg0: i32, %arg1: i32) -> (i32, i32) {
    %c0_i32 = arith.constant 0 : i32
    %c0_i32_0 = arith.constant 0 : i32
    return %arg0, %c0_i32 : i32, i32
  }
}

module attributes {stable_mosaic.version = 11 : i64} {
  func.func @_linear_kernel(%arg0: i32, %arg1: i32, %arg2: i32, %arg3: memref<2x32xbf16, #tpu.memory_space<vmem>>, %arg4: memref<32x10xbf16, #tpu.memory_space<vmem>>, %arg5: memref<1x10xf32, #tpu.memory_space<vmem>>, %arg6: memref<2x10xf32, #tpu.memory_space<vmem>>, %arg7: memref<2x10xf32, #tpu.memory_space<vmem>>) attributes {dimension_semantics = [#tpu.dimension_semantics<parallel>, #tpu.dimension_semantics<parallel>, #tpu.dimension_semantics<arbitrary>], iteration_bounds = array<i64: 1, 1, 1>, scalar_prefetch = 0 : i64, scratch_operands = 1 : i64, tpu.core_type = #tpu.core_type<tc>, window_params = [{transform_indices = @transform_0, window_bounds = array<i64: 2, 32>}, {transform_indices = @transform_1, window_bounds = array<i64: 32, 10>}, {transform_indices = @transform_2, window_bounds = array<i64: 1, 10>}, {transform_indices = @transform_3, window_bounds = array<i64: 2, 10>}]} {
    %c0_i32 = arith.constant 0 : i32
    %0 = arith.cmpi eq, %arg2, %c0_i32 : i32
    %1 = arith.extui %0 : i1 to i32
    %c0_i32_0 = arith.constant 0 : i32
    %2 = arith.cmpi ne, %1, %c0_i32_0 : i32
    scf.if %2 {
      %cst_10 = arith.constant 0.000000e+00 : f32
      %12 = vector.broadcast %cst_10 : f32 to vector<2x10xf32>
      %c0_11 = arith.constant 0 : index
      %c0_12 = arith.constant 0 : index
      %13 = vector.load %arg7[%c0_11, %c0_12] : memref<2x10xf32, #tpu.memory_space<vmem>>, vector<2x10xf32>
      tpu.vector_store %arg7[%c0_11, %c0_12], %12 {strides = array<i32>} : memref<2x10xf32, #tpu.memory_space<vmem>>, vector<2x10xf32>,
    } else {
    }
    %c0 = arith.constant 0 : index
    %c0_1 = arith.constant 0 : index
    %3 = vector.load %arg7[%c0, %c0_1] : memref<2x10xf32, #tpu.memory_space<vmem>>, vector<2x10xf32>
    %c0_2 = arith.constant 0 : index
    %c0_3 = arith.constant 0 : index
    %4 = vector.load %arg3[%c0_2, %c0_3] : memref<2x32xbf16, #tpu.memory_space<vmem>>, vector<2x32xbf16>
    %c0_4 = arith.constant 0 : index
    %c0_5 = arith.constant 0 : index
    %5 = vector.load %arg4[%c0_4, %c0_5] : memref<32x10xbf16, #tpu.memory_space<vmem>>, vector<32x10xbf16>
    %cst = arith.constant dense<0.000000e+00> : vector<2x10xf32>
    %6 = tpu.matmul %4, %5, %cst {dimension_numbers = #tpu.dot_dimension_numbers<[1], [0], [0], [1], [0, 0, 1, 1], [], []>} : vector<2x32xbf16>, vector<32x10xbf16>, vector<2x10xf32> -> vector<2x10xf32>
    %7 = arith.addf %3, %6 : vector<2x10xf32>
    %c0_6 = arith.constant 0 : index
    %c0_7 = arith.constant 0 : index
    %8 = vector.load %arg7[%c0_6, %c0_7] : memref<2x10xf32, #tpu.memory_space<vmem>>, vector<2x10xf32>
    tpu.vector_store %arg7[%c0_6, %c0_7], %7 {strides = array<i32>} : memref<2x10xf32, #tpu.memory_space<vmem>>, vector<2x10xf32>,
    %c0_i32_8 = arith.constant 0 : i32
    %9 = arith.cmpi eq, %arg2, %c0_i32_8 : i32
    %10 = arith.extui %9 : i1 to i32
    %c0_i32_9 = arith.constant 0 : i32
    %11 = arith.cmpi ne, %10, %c0_i32_9 : i32
    scf.if %11 {
      %c0_10 = arith.constant 0 : index
      %c0_11 = arith.constant 0 : index
      %12 = vector.load %arg7[%c0_10, %c0_11] : memref<2x10xf32, #tpu.memory_space<vmem>>, vector<2x10xf32>
      %c0_12 = arith.constant 0 : index
      %c0_13 = arith.constant 0 : index
      %13 = vector.load %arg5[%c0_12, %c0_13] : memref<1x10xf32, #tpu.memory_space<vmem>>, vector<1x10xf32>
      %14 = vector.broadcast %13 : vector<1x10xf32> to vector<2x10xf32>
      %15 = arith.addf %12, %14 : vector<2x10xf32>
      %c0_14 = arith.constant 0 : index
      %c0_15 = arith.constant 0 : index
      %16 = vector.load %arg6[%c0_14, %c0_15] : memref<2x10xf32, #tpu.memory_space<vmem>>, vector<2x10xf32>
      tpu.vector_store %arg6[%c0_14, %c0_15], %15 {strides = array<i32>} : memref<2x10xf32, #tpu.memory_space<vmem>>, vector<2x10xf32>,
    } else {
    }
    return
  }
  func.func @transform_0(%arg0: i32, %arg1: i32, %arg2: i32) -> (i32, i32) {
    %c0_i32 = arith.constant 0 : i32
    return %arg0, %arg2 : i32, i32
  }
  func.func @transform_1(%arg0: i32, %arg1: i32, %arg2: i32) -> (i32, i32) {
    %c0_i32 = arith.constant 0 : i32
    return %arg2, %arg1 : i32, i32
  }
  func.func @transform_2(%arg0: i32, %arg1: i32, %arg2: i32) -> (i32, i32) {
    %c0_i32 = arith.constant 0 : i32
    %c0_i32_0 = arith.constant 0 : i32
    return %c0_i32, %arg1 : i32, i32
  }
  func.func @transform_3(%arg0: i32, %arg1: i32, %arg2: i32) -> (i32, i32) {
    %c0_i32 = arith.constant 0 : i32
    return %arg0, %arg1 : i32, i32
  }
}

</mosaic_0001>

<bundles_post_ra>
// kernel: vit_forward.12
= control target key start
LH: loop header
LB: loop body
LE: loop exit
PB: predicated region body
PF: predicated region fallthrough
CT: control target
= control target key end

     0   :  { %vm19_vm0 = vcmask 261120   ;;  %v224_v1 = vmov 0.0   ;;  %vm74_vm1 = vcmask 523264   ;;  %vm173_vm2 = vcmask 257024   ;;  %s286_s1 = inlined_call_operand.vmem [shape: bf16[64,32], index: 1, kind: input, shape index: {}]   ;;  %s287_s0 = inlined_call_operand.vmem [shape: bf16[32,64], index: 0, kind: input, shape index: {}]   ;;  %s288_s2 = inlined_call_operand.vmem [shape: f32[1,32], index: 2, kind: input, shape index: {}]   ;;  %s289_s3 = inlined_call_operand.vmem [shape: bf16[32,32], index: 3, kind: output, shape index: {}]  }
   0x1   :  { %v218_v0 = vld [vmem:[%s286_s1] sm:$0xff]   ;;  %22 = vst.msk [vmem:[#allocation2 + $0x10] sm:$0xff] %vm19_vm0, %v224_v1  ;;  %20 = vst.msk [vmem:[#allocation2] sm:$0xff] %vm19_vm0, %v224_v1  ;;  %v219_v2 = vld [vmem:[%s286_s1 + $0x8] sm:$0xff]  }
   0x2   :  { %21 = vst.msk [vmem:[#allocation2 + $0x8] sm:$0xff] %vm19_vm0, %v224_v1  ;;  %23 = vst.msk [vmem:[#allocation2 + $0x18] sm:$0xff] %vm19_vm0, %v224_v1  ;;  %205 = vmatprep.subr.bf16.mxu0 %v218_v0  ;;  %v220_v3 = vld [vmem:[%s286_s1 + $0x10] sm:$0xff]   ;;  %v222_v4 = vld [vmem:[%s287_s0] sm:$0xff]  }
   0x3   :  { %206 = vmatpush3.bf16.msra.mxu0 %v218_v0  ;;  %213 = vmatprep.mubr.msk.bf16.mxu0 %vm74_vm1, %v222_v4  ;;  %v221_v5 = vld [vmem:[%s286_s1 + $0x18] sm:$0xff]   ;;  %v223_v6 = vld [vmem:[%s287_s0 + $0x8] sm:$0xff]   ;;  %v190_v19 = vld [vmem:[%s288_s2] ss:$0 sm:$0xff] }
   0x4   :  { %207 = vmatprep.subr.bf16.mxu0 %v219_v2 }
   0x7   :  { %208 = vmatpush3.bf16.msra.mxu0 %v219_v2 }
   0x8   :  { %209 = vmatprep.subr.bf16.mxu0 %v220_v3  ;;  %v26_v7 = vld [vmem:[#allocation2 + $0x10] sm:$0xff]  ;;  %v24_v8 = vld [vmem:[#allocation2] sm:$0xff] }
   0x9   :  { %v27_v10 = vld [vmem:[#allocation2 + $0x18] sm:$0xff]  ;;  %v25_v13 = vld [vmem:[#allocation2 + $0x8] sm:$0xff] }
   0xb   :  { %210 = vmatpush3.bf16.msra.mxu0 %v220_v3 }
   0xc   :  { %211 = vmatprep.subr.bf16.mxu0 %v221_v5 }
   0xf   :  { %212 = vmatpush3.bf16.msra.mxu0 %v221_v5 }
  0x12   :  { %214 = vmatmul.mubr.msk.bf16.vlgmr.msra.gmra.mrb[0].mxu0 %vm74_vm1, %v223_v6 }
  0xe5   :  { %v215_v9 = vpop.f32.mrb[0].mxu0 }
  0xe6   :  { %v132_v11 = vadd.f32 %v215_v9, %v26_v7  ;;  %v115_v12 = vpop.f32.mrb[1].mxu0 }
  0xe7   :  { %v130_v14 = vadd.f32 %v115_v12, %v24_v8  ;;  %v216_v15 = vpop.f32.mrb[2].mxu0 }
  0xe8   :  { %137 = vst.msk [vmem:[#allocation2 + $0x10] sm:$0xff] %vm19_vm0, %v132_v11  ;;  %v133_v16 = vadd.f32 %v216_v15, %v27_v10  ;;  %v118_v17 = vpop.f32.mrb[3].mxu0 }
  0xe9   :  { %135 = vst.msk [vmem:[#allocation2] sm:$0xff] %vm19_vm0, %v130_v14  ;;  %v131_v18 = vadd.f32 %v118_v17, %v25_v13 }
  0xea   :  { %138 = vst.msk [vmem:[#allocation2 + $0x18] sm:$0xff] %vm19_vm0, %v133_v16 }
  0xeb   :  { %136 = vst.msk [vmem:[#allocation2 + $0x8] sm:$0xff] %vm19_vm0, %v131_v18 }
  0xef   :  { %v144_v20 = vld [vmem:[#allocation2 + $0x10] sm:$0xff] }
  0xf0   :  { %v155_v21 = vadd.f32 %v190_v19, %v144_v20  ;;  %v142_v22 = vld [vmem:[#allocation2] sm:$0xff] }
  0xf1   :  { %v153_v23 = vadd.f32 %v190_v19, %v142_v22  ;;  %v145_v24 = vld [vmem:[#allocation2 + $0x18] sm:$0xff] }
  0xf2   :  { %v197_v25 = vpack.c.bf16 %v155_v21, %v155_v21  ;;  %v156_v26 = vadd.f32 %v190_v19, %v145_v24  ;;  %v143_v27 = vld [vmem:[#allocation2 + $0x8] sm:$0xff] }
  0xf3   :  { %v195_v28 = vpack.c.bf16 %v153_v23, %v153_v23  ;;  %v154_v29 = vadd.f32 %v190_v19, %v143_v27 }
  0xf4   :  { %176 = vst.msk [vmem:[%s289_s3 + $0x8] sm:$0xf] %vm173_vm2, %v197_v25  ;;  %v198_v30 = vpack.c.bf16 %v156_v26, %v156_v26 }
  0xf5   :  { %174 = vst.msk [vmem:[%s289_s3] sm:$0xf] %vm173_vm2, %v195_v28  ;;  %v196_v31 = vpack.c.bf16 %v154_v29, %v154_v29 }
  0xf6   :  { %177 = vst.msk [vmem:[%s289_s3 + $0xc] sm:$0xf] %vm173_vm2, %v198_v30 }
  0xf7   :  { %175 = vst.msk [vmem:[%s289_s3 + $0x4] sm:$0xf] %vm173_vm2, %v196_v31 }

// kernel: vit_forward.13
= control target key start
LH: loop header
LB: loop body
LE: loop exit
PB: predicated region body
PF: predicated region fallthrough
CT: control target
= control target key end

     0   :  { %vm19_vm0 = vcmask 785408   ;;  %v259_v0 = vmov 0.0   ;;  %vm260_vm1 = vmmov 0   ;;  %vm69_vm2 = vcmask 261120   ;;  %s338_s1 = inlined_call_operand.vmem [shape: bf16[32,96], index: 1, kind: input, shape index: {}]   ;;  %s339_s0 = inlined_call_operand.vmem [shape: bf16[48,32], index: 0, kind: input, shape index: {}]   ;;  %s340_s2 = inlined_call_operand.vmem [shape: f32[1,96], index: 2, kind: input, shape index: {}]   ;;  %s341_s3 = inlined_call_operand.vmem [shape: bf16[48,96], index: 3, kind: output, shape index: {}]  }
   0x1   :  { %248 = vmatprep.subr.bf16.mxu1 %v259_v0  ;;  %v254_v1 = vld [vmem:[%s338_s1] sm:$0xff]   ;;  %232 = vmatprep.subr.bf16.mxu0 %v259_v0  ;;  %22 = vst.msk [vmem:[#allocation2 + $0x10] sm:$0xff] %vm19_vm0, %v259_v0  ;;  %20 = vst.msk [vmem:[#allocation2] sm:$0xff] %vm19_vm0, %v259_v0  ;;  %v255_v2 = vld [vmem:[%s338_s1 + $0x8] sm:$0xff]   ;;  %vm195_vm3 = vcmask 781312  }
   0x2   :  { %21 = vst.msk [vmem:[#allocation2 + $0x8] sm:$0xff] %vm19_vm0, %v259_v0  ;;  %23 = vst.msk [vmem:[#allocation2 + $0x18] sm:$0xff] %vm19_vm0, %v259_v0  ;;  %240 = vmatprep.mubr.msk.bf16.mxu1 %vm260_vm1, %v259_v0  ;;  %236 = vmatprep.mubr.msk.bf16.mxu0 %vm260_vm1, %v259_v0  ;;  %v256_v3 = vld [vmem:[%s339_s0 + $0x8] sm:$0xff]   ;;  %v257_v4 = vld [vmem:[%s339_s0] sm:$0xff]  }
   0x3   :  { %24 = vst.msk [vmem:[#allocation2 + $0x20] sm:$0xff] %vm19_vm0, %v259_v0  ;;  %25 = vst.msk [vmem:[#allocation2 + $0x28] sm:$0xff] %vm19_vm0, %v259_v0  ;;  %250 = vmatpush3.bf16.msra.mxu1 %v254_v1  ;;  %233 = vmatpush3.bf16.msra.mxu0 %v254_v1  ;;  %v258_v5 = vld [vmem:[%s339_s0 + $0x10] sm:$0xff]   ;;  %v214_v23 = vld [vmem:[%s340_s2] ss:$0 sm:$0xff] }
   0x4   :  { %249 = vmatprep.subr.bf16.mxu1 %v259_v0  ;;  %234 = vmatprep.subr.bf16.mxu0 %v259_v0 }
   0x7   :  { %251 = vmatpush3.bf16.msra.mxu1 %v255_v2  ;;  %235 = vmatpush3.bf16.msra.mxu0 %v255_v2 }
   0x8   :  { %v28_v6 = vld [vmem:[#allocation2 + $0x10] sm:$0xff]  ;;  %v26_v7 = vld [vmem:[#allocation2] sm:$0xff] }
   0x9   :  { %v29_v9 = vld [vmem:[#allocation2 + $0x18] sm:$0xff]  ;;  %v27_v11 = vld [vmem:[#allocation2 + $0x8] sm:$0xff] }
   0xa   :  { %241 = vmatmul.mubr.msk.bf16.vlgmr.msra.gmra.mrb[0].mxu1 %vm69_vm2, %v256_v3  ;;  %237 = vmatmul.mubr.msk.bf16.vlgmr.msra.gmra.mrb[0].mxu0 %vm69_vm2, %v257_v4  ;;  %v30_v22 = vld [vmem:[#allocation2 + $0x20] sm:$0xff]  ;;  %v31_v25 = vld [vmem:[#allocation2 + $0x28] sm:$0xff] }
   0xb   :  { %244 = vmatprep.mubr.msk.bf16.mxu1 %vm260_vm1, %v259_v0 }
  0x12   :  { %245 = vmatmul.mubr.msk.bf16.gmra.mrb[4].mxu1 %vm69_vm2, %v258_v5 }
  0xdd   :  { %v121_v8 = vpop.f32.mrb[0].mxu1  ;;  %v113_v10 = vpop.f32.mrb[0].mxu0 }
  0xde   :  { %v138_v12 = vadd.f32 %v121_v8, %v28_v6  ;;  %v242_v13 = vpop.f32.mrb[1].mxu1  ;;  %v136_v14 = vadd.f32 %v113_v10, %v26_v7  ;;  %v238_v15 = vpop.f32.mrb[1].mxu0 }
  0xdf   :  { %v124_v16 = vpop.f32.mrb[2].mxu1  ;;  %v116_v17 = vpop.f32.mrb[2].mxu0 }
  0xe0   :  { %145 = vst.msk [vmem:[#allocation2 + $0x10] sm:$0xff] %vm19_vm0, %v138_v12  ;;  %v139_v18 = vadd.f32 %v124_v16, %v29_v9  ;;  %v243_v19 = vpop.f32.mrb[3].mxu1  ;;  %143 = vst.msk [vmem:[#allocation2] sm:$0xff] %vm19_vm0, %v136_v14  ;;  %v137_v20 = vadd.f32 %v116_v17, %v27_v11  ;;  %v239_v21 = vpop.f32.mrb[3].mxu0 }
  0xe2   :  { %146 = vst.msk [vmem:[#allocation2 + $0x18] sm:$0xff] %vm19_vm0, %v139_v18  ;;  %144 = vst.msk [vmem:[#allocation2 + $0x8] sm:$0xff] %vm19_vm0, %v137_v20 }
  0xe5   :  { %v129_v24 = vpop.f32.mrb[4].mxu1 }
  0xe6   :  { %v140_v26 = vadd.f32 %v129_v24, %v30_v22  ;;  %v246_v27 = vpop.f32.mrb[5].mxu1 }
  0xe7   :  { %v154_v28 = vld [vmem:[#allocation2 + $0x10] sm:$0xff]  ;;  %v152_v29 = vld [vmem:[#allocation2] sm:$0xff]  ;;  %v132_v30 = vpop.f32.mrb[6].mxu1 }
  0xe8   :  { %v167_v31 = vadd.f32 %v214_v23, %v154_v28  ;;  %v165_v32 = vadd.f32 %v214_v23, %v152_v29  ;;  %147 = vst.msk [vmem:[#allocation2 + $0x20] sm:$0xff] %vm19_vm0, %v140_v26  ;;  %v141_v33 = vadd.f32 %v132_v30, %v31_v25  ;;  %v247_v34 = vpop.f32.mrb[7].mxu1 }
  0xe9   :  { %v155_v35 = vld [vmem:[#allocation2 + $0x18] sm:$0xff]  ;;  %v153_v36 = vld [vmem:[#allocation2 + $0x8] sm:$0xff] }
  0xea   :  { %v223_v37 = vpack.c.bf16 %v167_v31, %v167_v31  ;;  %v168_v38 = vadd.f32 %v214_v23, %v155_v35  ;;  %v221_v39 = vpack.c.bf16 %v165_v32, %v165_v32  ;;  %v166_v40 = vadd.f32 %v214_v23, %v153_v36  ;;  %148 = vst.msk [vmem:[#allocation2 + $0x28] sm:$0xff] %vm19_vm0, %v141_v33 }
  0xec   :  { %198 = vst.msk [vmem:[%s341_s3 + $0x8] sm:$0xf] %vm195_vm3, %v223_v37  ;;  %v224_v41 = vpack.c.bf16 %v168_v38, %v168_v38  ;;  %196 = vst.msk [vmem:[%s341_s3] sm:$0xf] %vm195_vm3, %v221_v39  ;;  %v222_v42 = vpack.c.bf16 %v166_v40, %v166_v40 }
  0xee   :  { %199 = vst.msk [vmem:[%s341_s3 + $0xc] sm:$0xf] %vm195_vm3, %v224_v41  ;;  %197 = vst.msk [vmem:[%s341_s3 + $0x4] sm:$0xf] %vm195_vm3, %v222_v42 }
  0xef   :  { %v156_v43 = vld [vmem:[#allocation2 + $0x20] sm:$0xff] }
  0xf0   :  { %v169_v44 = vadd.f32 %v214_v23, %v156_v43 }
  0xf1   :  { %v157_v45 = vld [vmem:[#allocation2 + $0x28] sm:$0xff] }
  0xf2   :  { %v225_v46 = vpack.c.bf16 %v169_v44, %v169_v44  ;;  %v170_v47 = vadd.f32 %v214_v23, %v157_v45 }
  0xf4   :  { %200 = vst.msk [vmem:[%s341_s3 + $0x10] sm:$0xf] %vm195_vm3, %v225_v46  ;;  %v226_v48 = vpack.c.bf16 %v170_v47, %v170_v47 }
  0xf6   :  { %201 = vst.msk [vmem:[%s341_s3 + $0x14] sm:$0xf] %vm195_vm3, %v226_v48 }

// kernel: vit_forward.14
= control target key start
LH: loop header
LB: loop body
LE: loop exit
PB: predicated region body
PF: predicated region fallthrough
CT: control target
= control target key end

     0   :  { %s1197_s6 = smov 0   ;;  %s1396_s0 = inlined_call_operand.vmem [shape: bf16[2,24,96], index: 0, kind: input, shape index: {}]   ;;  %s1397_s1 = inlined_call_operand.vmem [shape: bf16[2,24,32], index: 1, kind: output, shape index: {}]  }
   0x1 LB: > { %s934_s7 = sadd.s32 4294967295, %s1170_s6   ;;  %p938_p0 = scmp.ge.s32.totalorder %s1170_s6, 1  ;;  %s1170_s6 = sphi %s1197_s6, %s11_s6  }
   0x2   : > { %p87_p1 = scmp.lt.s32.totalorder %s1170_s6, 3 }
   0x4   : > { %p88_p2 = pnand %p938_p0, %p87_p1 }
   0x5   : > { %p107_p3 = scmp.lt.s32.totalorder (!%p88_p2), %s934_s7, 1  ;;  %vm137_vm0 = vcmask (!%p88_p2), 64512   ;;  %s1172_s12 = smov (!%p88_p2), 96   ;;  %vm245_vm1 = vcmask (!%p88_p2), 1043456   ;;  %v121_v9 = vlaneseq (!%p88_p2)  ;;  %v1174_v12 = vmov (!%p88_p2), -1e+30  }
   0x6   : > { %91 = sbr.rel (%p88_p2) target bundleno = 2062 (0x80e), region = 24  ;;  %s1173_s13 = smov (!%p88_p2), 64   ;;  %vm204_vm3 = vcmask (!%p88_p2), 195584   ;;  %vm855_vm4 = vcmask (!%p88_p2), 130048   ;;  %vm875_vm5 = vcmask (!%p88_p2), 257024  }
   0x7   : > { %v122_v10 = vand.u32 (!%p88_p2), 127, %v121_v9  ;;  %s1175_s14 = smov (!%p88_p2), 88   ;;  %s1176_s15 = smov (!%p88_p2), 120  }
   0x8   : > { %s1177_s16 = smov (!%p88_p2), 56   ;;  %s1178_s17 = smov (!%p88_p2), 80  }
   0x9   : > { %vm123_vm2 = vcmp.lt.s32.totalorder (!%p88_p2), %v122_v10, 17  ;;  %s1179_s18 = smov (!%p88_p2), 112   ;;  %s1180_s19 = smov (!%p88_p2), 48  }
   0xa   : > { %v1231_v13 = vsel (!%p88_p2), %vm123_vm2, 0.0, %v1174_v12  ;;  %s1181_s20 = smov (!%p88_p2), 72   ;;  %s1182_s21 = smov (!%p88_p2), 104  }
   0xb   : > { %s1183_s22 = smov (!%p88_p2), 40   ;;  %s1184_s23 = smov (!%p88_p2), 8  }
   0xc   : > { %s1185_s24 = smov (!%p88_p2), 16   ;;  %s1186_s25 = smov (!%p88_p2), 24  }
   0xd   : > { %s1399_s7 = smov (!%p107_p3, %s934_s7), 1 }
   0xe   : > { %s1075_s8 = smul.u32 12, %s1399_s7 }
  0x10   : > { %s111_s11 = scalar_lea.vmem %s1396_s0, %s1075_s8  ;;  %s116_s28 = scalar_lea.vmem %s1397_s1, %s1075_s8 }
  0x11   : > { %v1213_v0 = vld [vmem:[%s111_s11] sm:$0xff]   ;;  %v1216_v1 = vld [vmem:[%s111_s11 + $0x8] ss:$0 sps:$4 sm:$0xff]  }
  0x12   : > { %133 = vrot.lane.b32.xlu0 %v1213_v0, %s1172_s12  ;;  %1003 = vmatprep.mubr.msk.bf16.mxu0 %vm137_vm0, %v1213_v0 }
  0x13   : > { %234 = vrot.lane.b32.xlu1 %v1213_v0, %s1173_s13 }
  0x16   : > { %135 = vrot.lane.b32.xlu0 %v1216_v1, %s1172_s12 }
  0x17   : > { %236 = vrot.lane.b32.xlu1 %v1216_v1, %s1173_s13 }
  0x84   : > { %v134_v2 = vpop.permute.xlu0 %133 }
  0x85   : > { %1063 = vmatprep.subr.msk.bf16.mxu0 %vm137_vm0, %v134_v2  ;;  %v145_v3 = vsel %vm137_vm0, %v134_v2, 0  ;;  %v235_v6 = vpop.permute.xlu1 %234 }
  0x86   : > { %1000 = vmatpush3.bf16.xpose.msra.mxu0 %v145_v3  ;;  %1007 = vmatprep.subr.bf16.mxu1 %v235_v6 }
  0x87   : > { %1008 = vmatpush3.bf16.msra.mxu1 %v235_v6 }
  0x88   : > { %v136_v4 = vpop.permute.xlu0 %135 }
  0x89   : > { %1064 = vmatprep.subr.msk.bf16.mxu0 %vm137_vm0, %v136_v4  ;;  %v148_v5 = vsel %vm137_vm0, %v136_v4, 0  ;;  %v237_v7 = vpop.permute.xlu1 %236 }
  0x8a   : > { %1065 = vmatprep.subr.msk.bf16.mxu1 %vm245_vm1, %v237_v7  ;;  %v247_v8 = vsel %vm245_vm1, %v237_v7, 0 }
  0x8b   : > { %1010 = vmatpush3.bf16.msra.mxu1 %v247_v8 }
  0x8e   : > { %1002 = vmatpush3.bf16.xpose.msra.mxu0 %v148_v5 }
  0x95   : > { %1004 = vmatmul.mubr.msk.bf16.vlgmr.msra.gmra.mrb[0].mxu0 %vm137_vm0, %v1216_v1 }
 0x168   : > { %v1005_v11 = vpop.f32.mrb[0].mxu0 }
 0x169   : > { %v200_v14 = vmul.f32 0.35355338, %v1005_v11  ;;  %v184_v15 = vpop.f32.mrb[1].mxu0 }
 0x16a   : > { %v198_v16 = vmul.f32 0.35355338, %v184_v15  ;;  %v1006_v17 = vpop.f32.mrb[2].mxu0 }
 0x16b   : > { %v187_v18 = vpop.f32.mrb[3].mxu0  ;;  %v203_v19 = vadd.f32 %v200_v14, %v1231_v13 }
 0x16c   : > { %v199_v20 = vmul.f32 0.35355338, %v187_v18  ;;  %v201_v21 = vadd.f32 %v198_v16, %v1231_v13 }
 0x16d   : > { %v211_v22 = vsel %vm204_vm3, %v203_v19, -inf }
 0x16e   : > { %212 = vmax.xlane.f32.xlu0 %v211_v22  ;;  %v205_v23 = vsel %vm204_vm3, %v201_v21, -inf  ;;  %v202_v24 = vadd.f32 %v199_v20, %v1231_v13 }
 0x16f   : > { %206 = vmax.xlane.f32.xlu1 %v205_v23 }
 0x170   : > { %v208_v25 = vsel %vm204_vm3, %v202_v24, -inf }
 0x173   : > { %209 = vmax.xlane.f32.xlu1 %v208_v25 }
 0x184   : > { %307 = vrot.lane.b32.xlu1 %v1213_v0, %s1175_s14  ;;  %305 = vrot.lane.b32.xlu0 %v1216_v1, %s1176_s15 }
 0x188   : > { %309 = vrot.lane.b32.xlu1 %v1216_v1, %s1175_s14 }
 0x18c   : > { %303 = vrot.lane.b32.xlu1 %v1213_v0, %s1176_s15 }
 0x190   : > { %406 = vrot.lane.b32.xlu1 %v1213_v0, %s1177_s16 }
 0x1fb   : > { %v213_v26 = vpop.xlane.xlu0 %212 }
 0x1fc   : > { %v216_v27 = vsub.f32 %v203_v19, %v213_v26  ;;  %v207_v28 = vpop.xlane.xlu1 %206 }
 0x1fd   : > { %v214_v29 = vsub.f32 %v201_v21, %v207_v28 }
 0x1fe   : > { %v221_v30 = vmul.f32 1.442695, %v216_v27 }
 0x1ff   : > { %v217_v31 = vmul.f32 1.442695, %v214_v29  ;;  %v306_v45 = vpop.permute.xlu0 %305 }
 0x200   : > { %v210_v32 = vpop.xlane.xlu1 %209  ;;  %1116 = vpow2.f32 %v221_v30 }
 0x201   : > { %v215_v33 = vsub.f32 %v202_v24, %v210_v32  ;;  %1118 = vpow2.f32 %v217_v31 }
 0x203   : > { %v219_v34 = vmul.f32 1.442695, %v215_v33 }
 0x204   : > { %v308_v35 = vpop.permute.xlu1 %307 }
 0x205   : > { %1120 = vpow2.f32 %v219_v34  ;;  %1066 = vmatprep.subr.msk.bf16.mxu1 %vm137_vm0, %v308_v35  ;;  %v318_v41 = vsel %vm137_vm0, %v308_v35, 0 }
 0x208   : > { %v310_v37 = vpop.permute.xlu1 %309 }
 0x209   : > { %v321_v44 = vsel %vm137_vm0, %v310_v37, 0 }
 0x20a   : > { %v1246_v36 = vpop.eup %1116 }
 0x20b   : > { %v1248_v38 = vpop.eup %1118  ;;  %v233_v42 = vpack.c.bf16 %v1246_v36, %v1246_v36 }
 0x20c   : > { %v304_v43 = vpop.permute.xlu1 %303 }
 0x20f   : > { %v1250_v39 = vpop.eup %1120 }
 0x210   : > { %v232_v40 = vpack.c.bf16 %v1250_v39, %v1248_v38  ;;  %v407_v46 = vpop.permute.xlu1 %406 }
 0x211   : > { %1023 = vmatprep.subr.bf16.mxu0 %v407_v46 }
 0x212   : > { %1011 = vmatprep.mubr.msk.bf16.mxu1 %vm204_vm3, %v232_v40  ;;  %1024 = vmatpush3.bf16.msra.mxu0 %v407_v46 }
 0x213   : > { %1012 = vmatmul.mubr.msk.bf16.vlgmr.msra.gmra.mrb[0].mxu1 %vm204_vm3, %v233_v42 }
 0x214   : > { %1016 = vmatpush3.bf16.xpose.msra.mxu1 %v318_v41  ;;  %1019 = vmatprep.mubr.msk.bf16.mxu1 %vm137_vm0, %v304_v43 }
 0x215   : > { %1067 = vmatprep.subr.msk.bf16.mxu1 %vm137_vm0, %v310_v37 }
 0x21c   : > { %1018 = vmatpush3.bf16.xpose.msra.mxu1 %v321_v44 }
 0x223   : > { %1020 = vmatmul.mubr.msk.bf16.vlgmr.msra.gmra.mrb[4].mxu1 %vm137_vm0, %v306_v45 }
 0x2e6   : > { %v1263_v47 = vpop.f32.mrb[0].mxu1 }
 0x2e7   : > { %v1265_v48 = vpop.f32.mrb[1].mxu1 }
 0x2e8   : > { %v1014_v49 = vpop.f32.mrb[2].mxu1 }
 0x2e9   : > { %v1267_v50 = vpop.f32.mrb[3].mxu1 }
 0x2f6   : > { %v1021_v51 = vpop.f32.mrb[4].mxu1 }
 0x2f7   : > { %v373_v52 = vmul.f32 0.35355338, %v1021_v51  ;;  %v357_v53 = vpop.f32.mrb[5].mxu1 }
 0x2f8   : > { %v371_v54 = vmul.f32 0.35355338, %v357_v53  ;;  %v1022_v55 = vpop.f32.mrb[6].mxu1 }
 0x2f9   : > { %v360_v56 = vpop.f32.mrb[7].mxu1  ;;  %v376_v57 = vadd.f32 %v373_v52, %v1231_v13 }
 0x2fa   : > { %v372_v58 = vmul.f32 0.35355338, %v360_v56  ;;  %v374_v60 = vadd.f32 %v371_v54, %v1231_v13 }
 0x2fb   : > { %v383_v59 = vsel %vm204_vm3, %v376_v57, -inf }
 0x2fc   : > { %384 = vmax.xlane.f32.xlu1 %v383_v59  ;;  %v375_v61 = vadd.f32 %v372_v58, %v1231_v13  ;;  %v377_v63 = vsel %vm204_vm3, %v374_v60, -inf }
 0x2fe   : > { %v380_v62 = vsel %vm204_vm3, %v375_v61, -inf }
 0x2ff   : > { %381 = vmax.xlane.f32.xlu0 %v380_v62 }
 0x300   : > { %378 = vmax.xlane.f32.xlu1 %v377_v63 }
 0x311   : > { %478 = vrot.lane.b32.xlu1 %v1213_v0, %s1178_s17 }
 0x315   : > { %408 = vrot.lane.b32.xlu0 %v1216_v1, %s1177_s16  ;;  %480 = vrot.lane.b32.xlu1 %v1216_v1, %s1178_s17 }
 0x319   : > { %474 = vrot.lane.b32.xlu1 %v1213_v0, %s1179_s18 }
 0x31d   : > { %476 = vrot.lane.b32.xlu1 %v1216_v1, %s1179_s18 }
 0x321   : > { %579 = vrot.lane.b32.xlu1 %v1216_v1, %s1180_s19 }
 0x389   : > { %v385_v2 = vpop.xlane.xlu1 %384 }
 0x38a   : > { %v388_v3 = vsub.f32 %v376_v57, %v385_v2 }
 0x38c   : > { %v393_v4 = vmul.f32 1.442695, %v388_v3  ;;  %v382_v5 = vpop.xlane.xlu0 %381 }
 0x38d   : > { %v387_v6 = vsub.f32 %v375_v61, %v382_v5  ;;  %v379_v7 = vpop.xlane.xlu1 %378 }
 0x38e   : > { %v386_v8 = vsub.f32 %v374_v60, %v379_v7  ;;  %1122 = vpow2.f32 %v393_v4 }
 0x38f   : > { %v391_v9 = vmul.f32 1.442695, %v387_v6 }
 0x390   : > { %v389_v10 = vmul.f32 1.442695, %v386_v8  ;;  %v409_v11 = vpop.permute.xlu0 %408 }
 0x391   : > { %1124 = vpow2.f32 %v391_v9  ;;  %v418_v12 = vsel %vm245_vm1, %v409_v11, 0  ;;  %1068 = vmatprep.subr.msk.bf16.mxu0 %vm245_vm1, %v409_v11  ;;  %v479_v14 = vpop.permute.xlu1 %478 }
 0x392   : > { %1126 = vpow2.f32 %v389_v10  ;;  %1026 = vmatpush3.bf16.msra.mxu0 %v418_v12  ;;  %v489_v20 = vsel %vm137_vm0, %v479_v14, 0 }
 0x393   : > { %1069 = vmatprep.subr.msk.bf16.mxu0 %vm137_vm0, %v479_v14 }
 0x395   : > { %v481_v15 = vpop.permute.xlu1 %480 }
 0x396   : > { %v492_v23 = vsel %vm137_vm0, %v481_v15, 0 }
 0x398   : > { %v1286_v16 = vpop.eup %1122 }
 0x399   : > { %v405_v21 = vpack.c.bf16 %v1286_v16, %v1286_v16  ;;  %v475_v22 = vpop.permute.xlu1 %474 }
 0x39b   : > { %v1288_v17 = vpop.eup %1124 }
 0x39c   : > { %v1290_v18 = vpop.eup %1126 }
 0x39d   : > { %v404_v19 = vpack.c.bf16 %v1288_v17, %v1290_v18  ;;  %v477_v24 = vpop.permute.xlu1 %476 }
 0x39f   : > { %1027 = vmatprep.mubr.msk.bf16.mxu0 %vm204_vm3, %v404_v19 }
 0x3a0   : > { %1028 = vmatmul.mubr.msk.bf16.vlgmr.msra.gmra.mrb[4].mxu0 %vm204_vm3, %v405_v21 }
 0x3a1   : > { %1032 = vmatpush3.bf16.xpose.msra.mxu0 %v489_v20  ;;  %1035 = vmatprep.mubr.msk.bf16.mxu0 %vm137_vm0, %v475_v22  ;;  %v580_v45 = vpop.permute.xlu1 %579 }
 0x3a2   : > { %1070 = vmatprep.subr.msk.bf16.mxu0 %vm137_vm0, %v481_v15  ;;  %v589_v60 = vsel %vm245_vm1, %v580_v45, 0 }
 0x3a9   : > { %1034 = vmatpush3.bf16.xpose.msra.mxu0 %v492_v23 }
 0x3b0   : > { %1036 = vmatmul.mubr.msk.bf16.vlgmr.msra.gmra.mrb[8].mxu0 %vm137_vm0, %v477_v24 }
 0x473   : > { %v1303_v25 = vpop.f32.mrb[4].mxu0 }
 0x474   : > { %v1305_v26 = vpop.f32.mrb[5].mxu0 }
 0x475   : > { %v1030_v27 = vpop.f32.mrb[6].mxu0 }
 0x476   : > { %v1307_v28 = vpop.f32.mrb[7].mxu0 }
 0x483   : > { %v1037_v29 = vpop.f32.mrb[8].mxu0 }
 0x484   : > { %v544_v30 = vmul.f32 0.35355338, %v1037_v29  ;;  %v528_v31 = vpop.f32.mrb[9].mxu0 }
 0x485   : > { %v542_v32 = vmul.f32 0.35355338, %v528_v31  ;;  %v1038_v33 = vpop.f32.mrb[10].mxu0 }
 0x486   : > { %v531_v34 = vpop.f32.mrb[11].mxu0  ;;  %v547_v35 = vadd.f32 %v544_v30, %v1231_v13  ;;  %v395_v33 = vsel %vm204_vm3, %v1290_v18, 0.0 }
 0x487   : > { %v543_v37 = vmul.f32 0.35355338, %v531_v34  ;;  %v545_v41 = vadd.f32 %v542_v32, %v1231_v13  ;;  %v398_v34 = vsel %vm204_vm3, %v1288_v17, 0.0 }
 0x488   : > { %v554_v40 = vsel %vm204_vm3, %v547_v35, -inf }
 0x489   : > { %555 = vmax.xlane.f32.xlu0 %v554_v40  ;;  %v546_v42 = vadd.f32 %v543_v37, %v1231_v13  ;;  %v548_v44 = vsel %vm204_vm3, %v545_v41, -inf }
 0x48b   : > { %v551_v43 = vsel %vm204_vm3, %v546_v42, -inf }
 0x48c   : > { %552 = vmax.xlane.f32.xlu1 %v551_v43 }
 0x48d   : > { %549 = vmax.xlane.f32.xlu0 %v548_v44 }
 0x49d   : > { %649 = vrot.lane.b32.xlu1 %v1213_v0, %s1181_s20 }
 0x4a1   : > { %645 = vrot.lane.b32.xlu1 %v1213_v0, %s1182_s21 }
 0x4a3   : > { %577 = vrot.lane.b32.xlu0 %v1213_v0, %s1180_s19 }
 0x4a7   : > { %651 = vrot.lane.b32.xlu0 %v1216_v1, %s1181_s20 }
 0x4ab   : > { %647 = vrot.lane.b32.xlu0 %v1216_v1, %s1182_s21 }
 0x516   : > { %v556_v46 = vpop.xlane.xlu0 %555 }
 0x517   : > { %v559_v49 = vsub.f32 %v547_v35, %v556_v46 }
 0x519   : > { %v564_v51 = vmul.f32 1.442695, %v559_v49  ;;  %v553_v52 = vpop.xlane.xlu1 %552 }
 0x51a   : > { %v558_v53 = vsub.f32 %v546_v42, %v553_v52  ;;  %v550_v54 = vpop.xlane.xlu0 %549 }
 0x51b   : > { %v557_v55 = vsub.f32 %v545_v41, %v550_v54  ;;  %1128 = vpow2.f32 %v564_v51 }
 0x51c   : > { %v562_v56 = vmul.f32 1.442695, %v558_v53 }
 0x51d   : > { %v560_v57 = vmul.f32 1.442695, %v557_v55  ;;  %v650_v59 = vpop.permute.xlu1 %649 }
 0x51e   : > { %1130 = vpow2.f32 %v562_v56  ;;  %v578_v58 = vpop.permute.xlu0 %577  ;;  %v660_v3 = vsel %vm137_vm0, %v650_v59, 0 }
 0x51f   : > { %1132 = vpow2.f32 %v560_v57  ;;  %1039 = vmatprep.subr.bf16.mxu1 %v578_v58 }
 0x520   : > { %1040 = vmatpush3.bf16.msra.mxu1 %v578_v58 }
 0x521   : > { %1071 = vmatprep.subr.msk.bf16.mxu1 %vm245_vm1, %v580_v45  ;;  %v646_v5 = vpop.permute.xlu1 %645 }
 0x522   : > { %v652_v6 = vpop.permute.xlu0 %651 }
 0x523   : > { %v663_v7 = vsel %vm137_vm0, %v652_v6, 0 }
 0x524   : > { %1042 = vmatpush3.bf16.msra.mxu1 %v589_v60  ;;  %v226_v60 = vsel %vm204_vm3, %v1250_v39, 0.0 }
 0x525   : > { %1072 = vmatprep.subr.msk.bf16.mxu1 %vm137_vm0, %v650_v59  ;;  %v1129_v61 = vpop.eup %1128  ;;  %v223_v59 = vsel %vm204_vm3, %v1248_v38, 0.0 }
 0x526   : > { %v576_v4 = vpack.c.bf16 %v1129_v61, %v1129_v61  ;;  %v648_v8 = vpop.permute.xlu0 %647 }
 0x528   : > { %v1131_v62 = vpop.eup %1130 }
 0x529   : > { %v1133_v63 = vpop.eup %1132  ;;  %v569_v37 = vsel %vm204_vm3, %v1131_v62, 0.0 }
 0x52a   : > { %v575_v2 = vpack.c.bf16 %v1131_v62, %v1133_v63  ;;  %v566_v35 = vsel %vm204_vm3, %v1133_v63, 0.0 }
 0x52c   : > { %1043 = vmatprep.mubr.msk.bf16.mxu1 %vm204_vm3, %v575_v2 }
 0x52d   : > { %1044 = vmatmul.mubr.msk.bf16.vlgmr.msra.gmra.mrb[8].mxu1 %vm204_vm3, %v576_v4 }
 0x52e   : > { %1048 = vmatpush3.bf16.xpose.msra.mxu1 %v660_v3  ;;  %1051 = vmatprep.mubr.msk.bf16.mxu1 %vm137_vm0, %v646_v5 }
 0x52f   : > { %1073 = vmatprep.subr.msk.bf16.mxu1 %vm137_vm0, %v652_v6 }
 0x536   : > { %1050 = vmatpush3.bf16.xpose.msra.mxu1 %v663_v7 }
 0x53d   : > { %1052 = vmatmul.mubr.msk.bf16.vlgmr.msra.gmra.mrb[12].mxu1 %vm137_vm0, %v648_v8 }
 0x600   : > { %v1331_v9 = vpop.f32.mrb[8].mxu1 }
 0x601   : > { %v1333_v10 = vpop.f32.mrb[9].mxu1 }
 0x602   : > { %v1046_v11 = vpop.f32.mrb[10].mxu1 }
 0x603   : > { %v1335_v12 = vpop.f32.mrb[11].mxu1 }
 0x610   : > { %v1053_v14 = vpop.f32.mrb[12].mxu1 }
 0x611   : > { %v715_v15 = vmul.f32 0.35355338, %v1053_v14  ;;  %v699_v19 = vpop.f32.mrb[13].mxu1 }
 0x612   : > { %v713_v20 = vmul.f32 0.35355338, %v699_v19  ;;  %v1054_v21 = vpop.f32.mrb[14].mxu1 }
 0x613   : > { %v702_v22 = vpop.f32.mrb[15].mxu1  ;;  %v718_v23 = vadd.f32 %v715_v15, %v1231_v13 }
 0x614   : > { %v714_v24 = vmul.f32 0.35355338, %v702_v22  ;;  %v716_v27 = vadd.f32 %v713_v20, %v1231_v13 }
 0x615   : > { %v725_v29 = vsel %vm204_vm3, %v718_v23, -inf }
 0x616   : > { %v717_v30 = vadd.f32 %v714_v24, %v1231_v13  ;;  %726 = vmax.xlane.f32.xlu0 %v725_v29  ;;  %v719_v31 = vsel %vm204_vm3, %v716_v27, -inf  ;;  %v401_v13 = vsel %vm204_vm3, %v1286_v16, 0.0 }
 0x617   : > { %720 = vmax.xlane.f32.xlu1 %v719_v31 }
 0x618   : > { %v722_v32 = vsel %vm204_vm3, %v717_v30, -inf }
 0x61a   : > { %723 = vmax.xlane.f32.xlu0 %v722_v32 }
 0x628   : > { %748 = vrot.lane.b32.xlu1 %v1213_v0, %s1183_s22  ;;  %v572_v0 = vsel %vm204_vm3, %v1129_v61, 0.0  ;;  %v229_v61 = vsel %vm204_vm3, %v1246_v36, 0.0 }
 0x630   : > { %750 = vrot.lane.b32.xlu0 %v1216_v1, %s1183_s22 }
 0x64c   : > { %396 = vadd.xlane.f32.xlu1 %v395_v33 }
 0x64f   : > { %399 = vadd.xlane.f32.xlu0 %v398_v34 }
 0x650   : > { %402 = vadd.xlane.f32.xlu1 %v401_v13 }
 0x653   : > { %567 = vadd.xlane.f32.xlu0 %v566_v35 }
 0x654   : > { %570 = vadd.xlane.f32.xlu1 %v569_v37 }
 0x657   : > { %573 = vadd.xlane.f32.xlu0 %v572_v0 }
 0x6a3   : > { %v727_v1 = vpop.xlane.xlu0 %726 }
 0x6a4   : > { %v730_v18 = vsub.f32 %v718_v23, %v727_v1  ;;  %v721_v40 = vpop.xlane.xlu1 %720 }
 0x6a5   : > { %v728_v41 = vsub.f32 %v716_v27, %v721_v40 }
 0x6a6   : > { %v735_v42 = vmul.f32 1.442695, %v730_v18 }
 0x6a7   : > { %v731_v17 = vmul.f32 1.442695, %v728_v41  ;;  %v724_v43 = vpop.xlane.xlu0 %723 }
 0x6a8   : > { %v729_v44 = vsub.f32 %v717_v30, %v724_v43  ;;  %v749_v45 = vpop.permute.xlu1 %748 }
 0x6a9   : > { %1134 = vpow2.f32 %v731_v17  ;;  %1055 = vmatprep.subr.bf16.mxu0 %v749_v45 }
 0x6aa   : > { %v733_v16 = vmul.f32 1.442695, %v729_v44  ;;  %1056 = vmatpush3.bf16.msra.mxu0 %v749_v45  ;;  %1136 = vpow2.f32 %v735_v42 }
 0x6ab   : > { %v751_v46 = vpop.permute.xlu0 %750 }
 0x6ac   : > { %1138 = vpow2.f32 %v733_v16  ;;  %v760_v49 = vsel %vm245_vm1, %v751_v46, 0  ;;  %1074 = vmatprep.subr.msk.bf16.mxu0 %vm245_vm1, %v751_v46 }
 0x6ae   : > { %1058 = vmatpush3.bf16.msra.mxu0 %v760_v49 }
 0x6b3   : > { %v1135_v51 = vpop.eup %1134 }
 0x6b4   : > { %v737_v52 = vsel %vm204_vm3, %v1135_v51, 0.0  ;;  %v1137_v53 = vpop.eup %1136 }
 0x6b5   : > { %738 = vadd.xlane.f32.xlu1 %v737_v52  ;;  %v743_v57 = vsel %vm204_vm3, %v1137_v53, 0.0  ;;  %v747_v58 = vpack.c.bf16 %v1137_v53, %v1137_v53 }
 0x6b6   : > { %v1139_v54 = vpop.eup %1138 }
 0x6b7   : > { %v740_v55 = vsel %vm204_vm3, %v1139_v54, 0.0  ;;  %v746_v56 = vpack.c.bf16 %v1139_v54, %v1135_v51 }
 0x6b8   : > { %741 = vadd.xlane.f32.xlu0 %v740_v55 }
 0x6b9   : > { %744 = vadd.xlane.f32.xlu1 %v743_v57  ;;  %1059 = vmatprep.mubr.msk.bf16.mxu0 %vm204_vm3, %v746_v56 }
 0x6ba   : > { %1060 = vmatmul.mubr.msk.bf16.vlgmr.msra.gmra.mrb[12].mxu0 %vm204_vm3, %v747_v58 }
 0x6bc   : > { %224 = vadd.xlane.f32.xlu0 %v223_v59 }
 0x6bd   : > { %227 = vadd.xlane.f32.xlu1 %v226_v60 }
 0x6c0   : > { %230 = vadd.xlane.f32.xlu0 %v229_v61 }
 0x6d9   : > { %v397_v62 = vpop.xlane.xlu1 %396 }
 0x6da   : > { %1140 = vrcp.f32 %v397_v62 }
 0x6dc   : > { %v400_v63 = vpop.xlane.xlu0 %399 }
 0x6dd   : > { %1142 = vrcp.f32 %v400_v63  ;;  %v403_v2 = vpop.xlane.xlu1 %402 }
 0x6de   : > { %1144 = vrcp.f32 %v403_v2 }
 0x6e0   : > { %v568_v3 = vpop.xlane.xlu0 %567 }
 0x6e1   : > { %1146 = vrcp.f32 %v568_v3  ;;  %v571_v4 = vpop.xlane.xlu1 %570 }
 0x6e2   : > { %1148 = vrcp.f32 %v571_v4 }
 0x6e4   : > { %v574_v38 = vpop.xlane.xlu0 %573  ;;  %v1141_v5 = vpop.eup %1140 }
 0x6e5   : > { %1150 = vrcp.f32 %v574_v38  ;;  %v471_v7 = vmul.f32 %v1141_v5, %v1305_v26 }
 0x6e7   : > { %v1143_v6 = vpop.eup %1142 }
 0x6e8   : > { %v1145_v39 = vpop.eup %1144  ;;  %v472_v36 = vmul.f32 %v1143_v6, %v1307_v28 }
 0x6e9   : > { %v473_v8 = vmul.f32 %v1145_v39, %v1303_v25 }
 0x6ea   : > { %v1099_v11 = vpack.i.bf16 %v472_v36, %v471_v7 }
 0x6eb   : > { %v1147_v14 = vpop.eup %1146  ;;  %823 = vrot.lane.b32.xlu0 %v473_v8, %s1184_s23 }
 0x6ec   : > { %v1149_v15 = vpop.eup %1148  ;;  %1100 = vrot.lane.b32.xlu1 %v1099_v11, %s1184_s23  ;;  %v642_v19 = vmul.f32 %v1147_v14, %v1333_v10 }
 0x6ed   : > { %v643_v20 = vmul.f32 %v1149_v15, %v1335_v12 }
 0x6ef   : > { %v1104_v21 = vpack.i.bf16 %v643_v20, %v642_v19  ;;  %v1151_v22 = vpop.eup %1150 }
 0x6f0   : > { %v644_v26 = vmul.f32 %v1151_v22, %v1331_v9 }
 0x6f1   : > { %1105 = vrot.lane.b32.xlu1 %v1104_v21, %s1185_s24 }
 0x6f5   : > { %835 = vrot.lane.b32.xlu1 %v644_v26, %s1185_s24 }
 0x742   : > { %v739_v28 = vpop.xlane.xlu1 %738 }
 0x745   : > { %v742_v25 = vpop.xlane.xlu0 %741 }
 0x746   : > { %v745_v23 = vpop.xlane.xlu1 %744 }
 0x747   : > { %1152 = vrcp.f32 %v745_v23 }
 0x748   : > { %1154 = vrcp.f32 %v739_v28 }
 0x749   : > { %1156 = vrcp.f32 %v742_v25  ;;  %v225_v13 = vpop.xlane.xlu0 %224 }
 0x74a   : > { %v228_v35 = vpop.xlane.xlu1 %227 }
 0x74d   : > { %v231_v37 = vpop.xlane.xlu0 %230 }
 0x74e   : > { %1158 = vrcp.f32 %v231_v37 }
 0x74f   : > { %1160 = vrcp.f32 %v225_v13 }
 0x750   : > { %1162 = vrcp.f32 %v228_v35 }
 0x751   : > { %v1153_v24 = vpop.eup %1152 }
 0x752   : > { %v1155_v10 = vpop.eup %1154 }
 0x753   : > { %v1157_v12 = vpop.eup %1156 }
 0x758   : > { %v1159_v18 = vpop.eup %1158 }
 0x759   : > { %v302_v42 = vmul.f32 %v1159_v18, %v1263_v47  ;;  %v1161_v43 = vpop.eup %1160 }
 0x75a   : > { %v1163_v16 = vpop.eup %1162  ;;  %v300_v55 = vmul.f32 %v1161_v43, %v1265_v48 }
 0x75b   : > { %v301_v54 = vmul.f32 %v1163_v16, %v1267_v50 }
 0x75d   : > { %v824_v40 = vpop.permute.xlu0 %823 }
 0x75e   : > { %v1101_v0 = vpop.permute.xlu1 %1100  ;;  %v854_v17 = vsel %vm137_vm0, %v302_v42, %v824_v40 }
 0x75f   : > { %v1103_v49 = vunpack.i.h.bf16 %v1101_v0  ;;  %v1102_v51 = vunpack.i.l.bf16 %v1101_v0 }
 0x761   : > { %v853_v57 = vsel %vm137_vm0, %v301_v54, %v1103_v49  ;;  %v852_v58 = vsel %vm137_vm0, %v300_v55, %v1102_v51 }
 0x763   : > { %v1106_v1 = vpop.permute.xlu1 %1105 }
 0x764   : > { %v1108_v47 = vunpack.i.h.bf16 %v1106_v1  ;;  %v1107_v53 = vunpack.i.l.bf16 %v1106_v1 }
 0x766   : > { %v857_v61 = vsel %vm855_vm4, %v853_v57, %v1108_v47  ;;  %v856_v62 = vsel %vm855_vm4, %v852_v58, %v1107_v53 }
 0x767   : > { %v836_v41 = vpop.permute.xlu1 %835 }
 0x768   : > { %v858_v44 = vsel %vm855_vm4, %v854_v17, %v836_v41 }
 0x78d   : > { %v1061_v27 = vpop.f32.mrb[12].mxu0 }
 0x78e   : > { %v815_v29 = vmul.f32 %v1153_v24, %v1061_v27  ;;  %v796_v30 = vpop.f32.mrb[13].mxu0 }
 0x78f   : > { %v1062_v31 = vpop.f32.mrb[14].mxu0  ;;  %v813_v33 = vmul.f32 %v1155_v10, %v796_v30 }
 0x790   : > { %v799_v32 = vpop.f32.mrb[15].mxu0  ;;  %847 = vrot.lane.b32.xlu1 %v815_v29, %s1186_s25 }
 0x791   : > { %v814_v34 = vmul.f32 %v1157_v12, %v799_v32 }
 0x793   : > { %v1109_v9 = vpack.i.bf16 %v814_v34, %v813_v33 }
 0x795   : > { %1110 = vrot.lane.b32.xlu0 %v1109_v9, %s1186_s25 }
 0x802   : > { %v848_v45 = vpop.permute.xlu1 %847 }
 0x803   : > { %v861_v46 = vsel %vm204_vm3, %v858_v44, %v848_v45 }
 0x804   : > { %v966_v52 = vpack.c.bf16 %v861_v46, %v861_v46 }
 0x806   : > { %878 = vst.msk [vmem:[%s116_s28 + $0x8] sm:$0xf] %vm875_vm5, %v966_v52 }
 0x807   : > { %v1111_v56 = vpop.permute.xlu0 %1110 }
 0x808   : > { %v1113_v59 = vunpack.i.h.bf16 %v1111_v56  ;;  %v1112_v60 = vunpack.i.l.bf16 %v1111_v56 }
 0x80a   : > { %v860_v63 = vsel %vm204_vm3, %v857_v61, %v1113_v59  ;;  %v859_v2 = vsel %vm204_vm3, %v856_v62, %v1112_v60 }
 0x80b   : > { %v965_v50 = vpack.c.bf16 %v860_v63, %v860_v63  ;;  %v964_v3 = vpack.c.bf16 %v859_v2, %v859_v2 }
 0x80d   : > { %877 = vst.msk [vmem:[%s116_s28 + $0x4] sm:$0xf] %vm875_vm5, %v965_v50  ;;  %876 = vst.msk [vmem:[%s116_s28] sm:$0xf] %vm875_vm5, %v964_v3 }
 0x80e PF: > { %s11_s6 = sadd.s32 1, %s1170_s6  }
 0x80f   : > { %p8_p4 = scmp.ge.s32.totalorder %s11_s6, 4  }
 0x811   :  { %10 = sbr.rel (!%p8_p4) target bundleno = 1 (0x1), region = 54 }

// kernel: vit_forward.16
= control target key start
LH: loop header
LB: loop body
LE: loop exit
PB: predicated region body
PF: predicated region fallthrough
CT: control target
= control target key end

     0   :  { %v279_v0 = vmov 0.0   ;;  %vm280_vm0 = vmmov 0   ;;  %vm68_vm1 = vcmask 261120   ;;  %s331_s1 = inlined_call_operand.vmem [shape: bf16[32,128], index: 1, kind: input, shape index: {}]   ;;  %s332_s0 = inlined_call_operand.vmem [shape: bf16[48,32], index: 0, kind: input, shape index: {}]   ;;  %s333_s2 = inlined_call_operand.vmem [shape: f32[1,128], index: 2, kind: input, shape index: {}]   ;;  %s334_s3 = inlined_call_operand.vmem [shape: bf16[48,128], index: 3, kind: output, shape index: {}]  }
   0x1   :  { %268 = vmatprep.subr.bf16.mxu1 %v279_v0  ;;  %v274_v1 = vld [vmem:[%s331_s1] sm:$0xff]   ;;  %252 = vmatprep.subr.bf16.mxu0 %v279_v0  ;;  %v275_v2 = vld [vmem:[%s331_s1 + $0x8] sm:$0xff]   ;;  %v278_v5 = vld [vmem:[%s332_s0 + $0x10] sm:$0xff]  }
   0x2   :  { %260 = vmatprep.mubr.msk.bf16.mxu1 %vm280_vm0, %v279_v0  ;;  %256 = vmatprep.mubr.msk.bf16.mxu0 %vm280_vm0, %v279_v0  ;;  %v276_v3 = vld [vmem:[%s332_s0 + $0x8] sm:$0xff]   ;;  %v277_v4 = vld [vmem:[%s332_s0] sm:$0xff]  }
   0x3   :  { %270 = vmatpush3.bf16.msra.mxu1 %v274_v1  ;;  %253 = vmatpush3.bf16.msra.mxu0 %v274_v1  ;;  %v217_v6 = vld [vmem:[%s333_s2] ss:$0 sm:$0xff] }
   0x4   :  { %269 = vmatprep.subr.bf16.mxu1 %v279_v0  ;;  %254 = vmatprep.subr.bf16.mxu0 %v279_v0 }
   0x7   :  { %271 = vmatpush3.bf16.msra.mxu1 %v275_v2  ;;  %255 = vmatpush3.bf16.msra.mxu0 %v275_v2 }
   0xa   :  { %261 = vmatmul.mubr.msk.bf16.vlgmr.msra.gmra.mrb[0].mxu1 %vm68_vm1, %v276_v3  ;;  %257 = vmatmul.mubr.msk.bf16.vlgmr.msra.gmra.mrb[0].mxu0 %vm68_vm1, %v277_v4 }
   0xb   :  { %264 = vmatprep.mubr.msk.bf16.mxu1 %vm280_vm0, %v279_v0 }
  0x12   :  { %265 = vmatmul.mubr.msk.bf16.gmra.mrb[4].mxu1 %vm68_vm1, %v278_v5 }
  0xdd   :  { %v120_v7 = vpop.f32.mrb[0].mxu1  ;;  %v112_v8 = vpop.f32.mrb[0].mxu0 }
  0xde   :  { %v165_v9 = vadd.f32 %v217_v6, %v120_v7  ;;  %v262_v10 = vpop.f32.mrb[1].mxu1  ;;  %v163_v11 = vadd.f32 %v217_v6, %v112_v8  ;;  %v258_v12 = vpop.f32.mrb[1].mxu0 }
  0xdf   :  { %v123_v13 = vpop.f32.mrb[2].mxu1  ;;  %v115_v14 = vpop.f32.mrb[2].mxu0 }
  0xe0   :  { %v166_v15 = vadd.f32 %v217_v6, %v123_v13  ;;  %v263_v16 = vpop.f32.mrb[3].mxu1  ;;  %v169_v17 = vmax.f32 %v163_v11, 0.0  ;;  %v164_v18 = vadd.f32 %v217_v6, %v115_v14  ;;  %v259_v19 = vpop.f32.mrb[3].mxu0  ;;  %v171_v20 = vmax.f32 %v165_v9, 0.0 }
  0xe2   :  { %v172_v21 = vmax.f32 %v166_v15, 0.0  ;;  %v170_v22 = vmax.f32 %v164_v18, 0.0 }
  0xe4   :  { %v238_v23 = vpack.c.bf16 %v172_v21, %v171_v20  ;;  %v233_v24 = vpack.c.bf16 %v170_v22, %v169_v17 }
  0xe5   :  { %v128_v25 = vpop.f32.mrb[4].mxu1 }
  0xe6   :  { %245 = vst [vmem:[%s334_s3 + $0x8] sm:$0xff] %v238_v23   ;;  %234 = vst [vmem:[%s334_s3] sm:$0xff] %v233_v24   ;;  %v167_v26 = vadd.f32 %v217_v6, %v128_v25  ;;  %v266_v27 = vpop.f32.mrb[5].mxu1 }
  0xe7   :  { %v131_v28 = vpop.f32.mrb[6].mxu1 }
  0xe8   :  { %v168_v29 = vadd.f32 %v217_v6, %v131_v28  ;;  %v267_v30 = vpop.f32.mrb[7].mxu1  ;;  %v173_v31 = vmax.f32 %v167_v26, 0.0 }
  0xea   :  { %v174_v32 = vmax.f32 %v168_v29, 0.0 }
  0xec   :  { %v243_v33 = vpack.c.bf16 %v174_v32, %v173_v31 }
  0xee   :  { %246 = vst [vmem:[%s334_s3 + $0x10] sm:$0xff] %v243_v33  }

// kernel: vit_forward.15
= control target key start
LH: loop header
LB: loop body
LE: loop exit
PB: predicated region body
PF: predicated region fallthrough
CT: control target
= control target key end

     0   :  { %vm28_vm0 = vcmask 261120   ;;  %v418_v0 = vmov 0.0   ;;  %vm419_vm1 = vmmov 0   ;;  %vm326_vm2 = vcmask 257024   ;;  %s554_s1 = inlined_call_operand.vmem [shape: bf16[32,32], index: 1, kind: input, shape index: {}]   ;;  %s555_s0 = inlined_call_operand.vmem [shape: bf16[48,32], index: 0, kind: input, shape index: {}]   ;;  %s556_s3 = inlined_call_operand.vmem [shape: bf16[48,32], index: 3, kind: input, shape index: {}]   ;;  %s557_s2 = inlined_call_operand.vmem [shape: f32[1,32], index: 2, kind: input, shape index: {}]   ;;  %s558_s4 = inlined_call_operand.vmem [shape: f32[1,32], index: 4, kind: input, shape index: {}]   ;;  %s559_s5 = inlined_call_operand.vmem [shape: f32[1,32], index: 5, kind: input, shape index: {}]   ;;  %s560_s6 = inlined_call_operand.vmem [shape: bf16[48,32], index: 6, kind: output, shape index: {}]  }
   0x1   :  { %379 = vmatprep.subr.bf16.mxu0 %v418_v0  ;;  %395 = vmatprep.subr.bf16.mxu1 %v418_v0  ;;  %v401_v1 = vld [vmem:[%s554_s1] sm:$0xff]   ;;  %29 = vst.msk [vmem:[#allocation2] sm:$0xff] %vm28_vm0, %v418_v0  ;;  %30 = vst.msk [vmem:[#allocation2 + $0x8] sm:$0xff] %vm28_vm0, %v418_v0  ;;  %v402_v2 = vld [vmem:[%s554_s1 + $0x8] sm:$0xff]  }
   0x2   :  { %31 = vst.msk [vmem:[#allocation2 + $0x10] sm:$0xff] %vm28_vm0, %v418_v0  ;;  %32 = vst.msk [vmem:[#allocation2 + $0x18] sm:$0xff] %vm28_vm0, %v418_v0  ;;  %383 = vmatprep.mubr.msk.bf16.mxu0 %vm419_vm1, %v418_v0  ;;  %387 = vmatprep.mubr.msk.bf16.mxu1 %vm419_vm1, %v418_v0  ;;  %v403_v3 = vld [vmem:[%s555_s0] sm:$0xff]   ;;  %v404_v4 = vld [vmem:[%s555_s0 + $0x8] sm:$0xff]  }
   0x3   :  { %33 = vst.msk [vmem:[#allocation2 + $0x20] sm:$0xff] %vm28_vm0, %v418_v0  ;;  %34 = vst.msk [vmem:[#allocation2 + $0x28] sm:$0xff] %vm28_vm0, %v418_v0  ;;  %380 = vmatpush3.bf16.msra.mxu0 %v401_v1  ;;  %397 = vmatpush3.bf16.msra.mxu1 %v401_v1  ;;  %v405_v5 = vld [vmem:[%s555_s0 + $0x10] sm:$0xff]   ;;  %v372_v23 = vld [vmem:[%s556_s3 + $0x8] sm:$0xff]  }
   0x4   :  { %381 = vmatprep.subr.bf16.mxu0 %v418_v0  ;;  %396 = vmatprep.subr.bf16.mxu1 %v418_v0  ;;  %v361_v24 = vld [vmem:[%s556_s3] sm:$0xff]   ;;  %v366_v30 = vunpack.c.l.bf16 %v372_v23  ;;  %v367_v35 = vunpack.c.h.bf16 %v372_v23  ;;  %v373_v47 = vld [vmem:[%s556_s3 + $0x10] sm:$0xff]  }
   0x5   :  { %v345_v27 = vld [vmem:[%s557_s2] ss:$0 sm:$0xff]  ;;  %v362_v31 = vunpack.c.l.bf16 %v361_v24  ;;  %v363_v40 = vunpack.c.h.bf16 %v361_v24  ;;  %v370_v52 = vunpack.c.l.bf16 %v373_v47  ;;  %v371_v57 = vunpack.c.h.bf16 %v373_v47 }
   0x7   :  { %382 = vmatpush3.bf16.msra.mxu0 %v402_v2  ;;  %398 = vmatpush3.bf16.msra.mxu1 %v402_v2 }
   0x8   :  { %v35_v6 = vld [vmem:[#allocation2] sm:$0xff]  ;;  %v36_v10 = vld [vmem:[#allocation2 + $0x8] sm:$0xff] }
   0x9   :  { %v37_v7 = vld [vmem:[#allocation2 + $0x10] sm:$0xff]  ;;  %v38_v11 = vld [vmem:[#allocation2 + $0x18] sm:$0xff] }
   0xa   :  { %384 = vmatmul.mubr.msk.bf16.vlgmr.msra.gmra.mrb[0].mxu0 %vm28_vm0, %v403_v3  ;;  %388 = vmatmul.mubr.msk.bf16.vlgmr.msra.gmra.mrb[0].mxu1 %vm28_vm0, %v404_v4  ;;  %v39_v22 = vld [vmem:[#allocation2 + $0x20] sm:$0xff]  ;;  %v40_v26 = vld [vmem:[#allocation2 + $0x28] sm:$0xff] }
   0xb   :  { %391 = vmatprep.mubr.msk.bf16.mxu1 %vm419_vm1, %v418_v0 }
  0x12   :  { %392 = vmatmul.mubr.msk.bf16.gmra.mrb[4].mxu1 %vm28_vm0, %v405_v5 }
  0xdd   :  { %v122_v8 = vpop.f32.mrb[0].mxu0  ;;  %v130_v9 = vpop.f32.mrb[0].mxu1 }
  0xde   :  { %v145_v12 = vadd.f32 %v122_v8, %v35_v6  ;;  %v147_v13 = vadd.f32 %v130_v9, %v37_v7  ;;  %v385_v14 = vpop.f32.mrb[1].mxu0  ;;  %v389_v15 = vpop.f32.mrb[1].mxu1 }
  0xdf   :  { %v125_v16 = vpop.f32.mrb[2].mxu0  ;;  %v133_v17 = vpop.f32.mrb[2].mxu1 }
  0xe0   :  { %151 = vst.msk [vmem:[#allocation2] sm:$0xff] %vm28_vm0, %v145_v12  ;;  %153 = vst.msk [vmem:[#allocation2 + $0x10] sm:$0xff] %vm28_vm0, %v147_v13  ;;  %v146_v18 = vadd.f32 %v125_v16, %v36_v10  ;;  %v148_v19 = vadd.f32 %v133_v17, %v38_v11  ;;  %v386_v20 = vpop.f32.mrb[3].mxu0  ;;  %v390_v21 = vpop.f32.mrb[3].mxu1 }
  0xe2   :  { %152 = vst.msk [vmem:[#allocation2 + $0x8] sm:$0xff] %vm28_vm0, %v146_v18  ;;  %154 = vst.msk [vmem:[#allocation2 + $0x18] sm:$0xff] %vm28_vm0, %v148_v19 }
  0xe5   :  { %v138_v25 = vpop.f32.mrb[4].mxu1 }
  0xe6   :  { %v149_v28 = vadd.f32 %v138_v25, %v39_v22  ;;  %v393_v29 = vpop.f32.mrb[5].mxu1 }
  0xe7   :  { %v141_v32 = vpop.f32.mrb[6].mxu1  ;;  %v162_v33 = vld [vmem:[#allocation2 + $0x10] sm:$0xff]  ;;  %v160_v34 = vld [vmem:[#allocation2] sm:$0xff] }
  0xe8   :  { %155 = vst.msk [vmem:[#allocation2 + $0x20] sm:$0xff] %vm28_vm0, %v149_v28  ;;  %v150_v36 = vadd.f32 %v141_v32, %v40_v26  ;;  %v394_v37 = vpop.f32.mrb[7].mxu1  ;;  %v175_v38 = vadd.f32 %v345_v27, %v162_v33  ;;  %v173_v39 = vadd.f32 %v345_v27, %v160_v34 }
  0xe9   :  { %v163_v41 = vld [vmem:[#allocation2 + $0x18] sm:$0xff]  ;;  %v161_v42 = vld [vmem:[#allocation2 + $0x8] sm:$0xff] }
  0xea   :  { %156 = vst.msk [vmem:[#allocation2 + $0x28] sm:$0xff] %vm28_vm0, %v150_v36  ;;  %v193_v43 = vadd.f32 %v366_v30, %v175_v38  ;;  %v191_v44 = vadd.f32 %v362_v31, %v173_v39  ;;  %v176_v45 = vadd.f32 %v345_v27, %v163_v41  ;;  %v174_v46 = vadd.f32 %v345_v27, %v161_v42 }
  0xec   :  { %v203_v48 = vsel %vm28_vm0, %v193_v43, 0.0  ;;  %v197_v49 = vsel %vm28_vm0, %v191_v44, 0.0  ;;  %v194_v50 = vadd.f32 %v367_v35, %v176_v45  ;;  %v192_v51 = vadd.f32 %v363_v40, %v174_v46 }
  0xed   :  { %204 = vadd.xlane.f32.xlu1 %v203_v48  ;;  %198 = vadd.xlane.f32.xlu0 %v197_v49  ;;  %v346_v48 = vld [vmem:[%s558_s4] ss:$0 sm:$0xff] }
  0xee   :  { %v206_v54 = vsel %vm28_vm0, %v194_v50, 0.0  ;;  %v200_v55 = vsel %vm28_vm0, %v192_v51, 0.0 }
  0xef   :  { %v164_v53 = vld [vmem:[#allocation2 + $0x20] sm:$0xff] }
  0xf0   :  { %v177_v56 = vadd.f32 %v345_v27, %v164_v53 }
  0xf1   :  { %207 = vadd.xlane.f32.xlu1 %v206_v54  ;;  %201 = vadd.xlane.f32.xlu0 %v200_v55  ;;  %v165_v58 = vld [vmem:[#allocation2 + $0x28] sm:$0xff] }
  0xf2   :  { %v195_v59 = vadd.f32 %v370_v52, %v177_v56  ;;  %v178_v60 = vadd.f32 %v345_v27, %v165_v58 }
  0xf4   :  { %v209_v61 = vsel %vm28_vm0, %v195_v59, 0.0  ;;  %v196_v62 = vadd.f32 %v371_v57, %v178_v60 }
  0xf5   :  { %210 = vadd.xlane.f32.xlu0 %v209_v61 }
  0xf6   :  { %v212_v63 = vsel %vm28_vm0, %v196_v62, 0.0 }
  0xf7   :  { %213 = vadd.xlane.f32.xlu1 %v212_v63 }
 0x17a   :  { %v205_v0 = vpop.xlane.xlu1 %204  ;;  %v199_v1 = vpop.xlane.xlu0 %198 }
 0x17b   :  { %v218_v2 = vmul.f32 0.03125, %v205_v0  ;;  %v216_v3 = vmul.f32 0.03125, %v199_v1 }
 0x17d   :  { %v503_v4 = vsub.f32 %v193_v43, %v218_v2  ;;  %v222_v5 = vsub.f32 %v191_v44, %v216_v3 }
 0x17e   :  { %v208_v6 = vpop.xlane.xlu1 %207  ;;  %v202_v7 = vpop.xlane.xlu0 %201 }
 0x17f   :  { %v219_v8 = vmul.f32 0.03125, %v208_v6  ;;  %v217_v9 = vmul.f32 0.03125, %v202_v7  ;;  %v228_v10 = vmul.f32 %v222_v5, %v222_v5  ;;  %v230_v11 = vmul.f32 %v503_v4, %v503_v4 }
 0x181   :  { %v507_v12 = vsub.f32 %v194_v50, %v219_v8  ;;  %v223_v13 = vsub.f32 %v192_v51, %v217_v9  ;;  %v234_v14 = vsel %vm28_vm0, %v228_v10, 0.0  ;;  %v240_v19 = vsel %vm28_vm0, %v230_v11, 0.0  ;;  %v347_v51 = vld [vmem:[%s559_s5] ss:$0 sm:$0xff] }
 0x182   :  { %235 = vadd.xlane.f32.xlu0 %v234_v14  ;;  %v211_v15 = vpop.xlane.xlu0 %210 }
 0x183   :  { %v220_v16 = vmul.f32 0.03125, %v211_v15  ;;  %v229_v17 = vmul.f32 %v223_v13, %v223_v13  ;;  %v231_v23 = vmul.f32 %v507_v12, %v507_v12 }
 0x184   :  { %v214_v18 = vpop.xlane.xlu1 %213 }
 0x185   :  { %v226_v20 = vsub.f32 %v195_v59, %v220_v16  ;;  %v221_v21 = vmul.f32 0.03125, %v214_v18  ;;  %v237_v22 = vsel %vm28_vm0, %v229_v17, 0.0  ;;  %v243_v26 = vsel %vm28_vm0, %v231_v23, 0.0 }
 0x186   :  { %241 = vadd.xlane.f32.xlu0 %v240_v19  ;;  %238 = vadd.xlane.f32.xlu1 %v237_v22 }
 0x187   :  { %v514_v24 = vsub.f32 %v196_v62, %v221_v21  ;;  %v232_v25 = vmul.f32 %v226_v20, %v226_v20 }
 0x189   :  { %v246_v27 = vsel %vm28_vm0, %v232_v25, 0.0  ;;  %v233_v28 = vmul.f32 %v514_v24, %v514_v24 }
 0x18a   :  { %244 = vadd.xlane.f32.xlu1 %v243_v26  ;;  %247 = vadd.xlane.f32.xlu0 %v246_v27 }
 0x18b   :  { %v249_v29 = vsel %vm28_vm0, %v233_v28, 0.0 }
 0x18e   :  { %250 = vadd.xlane.f32.xlu1 %v249_v29 }
 0x20f   :  { %v236_v30 = vpop.xlane.xlu0 %235 }
 0x210   :  { %v252_v31 = vmul.f32 0.03125, %v236_v30 }
 0x212   :  { %v258_v32 = vadd.f32 1e-05, %v252_v31 }
 0x213   :  { %v239_v33 = vpop.xlane.xlu1 %238  ;;  %v242_v34 = vpop.xlane.xlu0 %241 }
 0x214   :  { %406 = vrsqrt.f32 %v258_v32  ;;  %v253_v35 = vmul.f32 0.03125, %v239_v33  ;;  %v254_v36 = vmul.f32 0.03125, %v242_v34 }
 0x216   :  { %v259_v37 = vadd.f32 1e-05, %v253_v35  ;;  %v260_v38 = vadd.f32 1e-05, %v254_v36 }
 0x217   :  { %v245_v39 = vpop.xlane.xlu1 %244  ;;  %v248_v40 = vpop.xlane.xlu0 %247 }
 0x218   :  { %408 = vrsqrt.f32 %v259_v37  ;;  %v255_v41 = vmul.f32 0.03125, %v245_v39  ;;  %v256_v42 = vmul.f32 0.03125, %v248_v40 }
 0x219   :  { %410 = vrsqrt.f32 %v260_v38 }
 0x21a   :  { %v261_v43 = vadd.f32 1e-05, %v255_v41  ;;  %v262_v44 = vadd.f32 1e-05, %v256_v42 }
 0x21b   :  { %v251_v45 = vpop.xlane.xlu1 %250 }
 0x21c   :  { %412 = vrsqrt.f32 %v261_v43  ;;  %v257_v46 = vmul.f32 0.03125, %v251_v45 }
 0x21d   :  { %414 = vrsqrt.f32 %v262_v44 }
 0x21e   :  { %v407_v47 = vpop.eup %406  ;;  %v263_v49 = vadd.f32 1e-05, %v257_v46 }
 0x21f   :  { %v270_v50 = vmul.f32 %v407_v47, %v222_v5 }
 0x220   :  { %416 = vrsqrt.f32 %v263_v49 }
 0x221   :  { %v283_v52 = vmul.f32 %v346_v48, %v270_v50 }
 0x222   :  { %v409_v53 = vpop.eup %408 }
 0x223   :  { %v411_v54 = vpop.eup %410  ;;  %v296_v55 = vadd.f32 %v347_v51, %v283_v52  ;;  %v271_v56 = vmul.f32 %v409_v53, %v223_v13 }
 0x224   :  { %v272_v57 = vmul.f32 %v411_v54, %v503_v4 }
 0x225   :  { %v354_v58 = vpack.c.bf16 %v296_v55, %v296_v55  ;;  %v284_v59 = vmul.f32 %v346_v48, %v271_v56 }
 0x226   :  { %v413_v60 = vpop.eup %412  ;;  %v285_v61 = vmul.f32 %v346_v48, %v272_v57 }
 0x227   :  { %v415_v62 = vpop.eup %414  ;;  %327 = vst.msk [vmem:[%s560_s6] sm:$0xf] %vm326_vm2, %v354_v58  ;;  %v297_v63 = vadd.f32 %v347_v51, %v284_v59  ;;  %v273_v0 = vmul.f32 %v413_v60, %v507_v12 }
 0x228   :  { %v298_v1 = vadd.f32 %v347_v51, %v285_v61  ;;  %v274_v2 = vmul.f32 %v415_v62, %v226_v20 }
 0x229   :  { %v355_v3 = vpack.c.bf16 %v297_v63, %v297_v63  ;;  %v286_v5 = vmul.f32 %v346_v48, %v273_v0 }
 0x22a   :  { %v417_v6 = vpop.eup %416  ;;  %v356_v7 = vpack.c.bf16 %v298_v1, %v298_v1  ;;  %v287_v4 = vmul.f32 %v346_v48, %v274_v2 }
 0x22b   :  { %328 = vst.msk [vmem:[%s560_s6 + $0x4] sm:$0xf] %vm326_vm2, %v355_v3  ;;  %v299_v8 = vadd.f32 %v347_v51, %v286_v5  ;;  %v275_v9 = vmul.f32 %v417_v6, %v514_v24 }
 0x22c   :  { %329 = vst.msk [vmem:[%s560_s6 + $0x8] sm:$0xf] %vm326_vm2, %v356_v7  ;;  %v300_v10 = vadd.f32 %v347_v51, %v287_v4 }
 0x22d   :  { %v357_v11 = vpack.c.bf16 %v299_v8, %v299_v8  ;;  %v288_v12 = vmul.f32 %v346_v48, %v275_v9 }
 0x22e   :  { %v358_v13 = vpack.c.bf16 %v300_v10, %v300_v10 }
 0x22f   :  { %330 = vst.msk [vmem:[%s560_s6 + $0xc] sm:$0xf] %vm326_vm2, %v357_v11  ;;  %v301_v14 = vadd.f32 %v347_v51, %v288_v12 }
 0x230   :  { %331 = vst.msk [vmem:[%s560_s6 + $0x10] sm:$0xf] %vm326_vm2, %v358_v13 }
 0x231   :  { %v359_v15 = vpack.c.bf16 %v301_v14, %v301_v14 }
 0x233   :  { %332 = vst.msk [vmem:[%s560_s6 + $0x14] sm:$0xf] %vm326_vm2, %v359_v15 }

// kernel: vit_forward.23
= control target key start
LH: loop header
LB: loop body
LE: loop exit
PB: predicated region body
PF: predicated region fallthrough
CT: control target
= control target key end

     0   :  { %v158_v1 = vmov 0.0   ;;  %vm159_vm0 = vmmov 0   ;;  %vm20_vm1 = vcmask 74752   ;;  %s208_s0 = inlined_call_operand.vmem [shape: bf16[2,32], index: 0, kind: input, shape index: {}]   ;;  %s209_s1 = inlined_call_operand.vmem [shape: bf16[32,10], index: 1, kind: input, shape index: {}]   ;;  %s210_s2 = inlined_call_operand.vmem [shape: f32[1,10], index: 2, kind: input, shape index: {}]   ;;  %s211_s3 = inlined_call_operand.hbm [shape: f32[2,10], index: 3, kind: output, shape index: {}]  }
   0x1   :  { %v132_v0 = vld [vmem:[%s209_s1] sm:$0xff]   ;;  %121 = vmatprep.subr.bf16.mxu0 %v158_v1  ;;  %v133_v2 = vld [vmem:[%s209_s1 + $0x8] sm:$0xff]   ;;  %125 = vmatprep.mubr.msk.bf16.mxu0 %vm159_vm0, %v158_v1 }
   0x2   :  { %122 = vmatpush3.bf16.msra.mxu0 %v132_v0 }
   0x3   :  { %8 = vsyncpa [#allocation4], 0  ;;  %123 = vmatprep.subr.bf16.mxu0 %v158_v1  ;;  %21 = vst.msk [vmem:[#allocation2] sm:$0x3] %vm20_vm1, %v158_v1  ;;  %v23_v3 = vld [vmem:[%s208_s0] sm:$0x1] }
   0x4   :  { %vm40_vm2 = vcmask 261120   ;;  %v117_v10 = vld [vmem:[%s210_s2] ss:$0 sm:$0xff]  ;;  %s160_s19 = smov [#allocation3]  }
   0x5   :  { %s106_s20 = sshll.u32 %s160_s19, 4  ;;  %s107_s20 = int_to_ptr.vmem [resolvable:$true] %s106_s20 }
   0x6   :  { %124 = vmatpush3.bf16.msra.mxu0 %v133_v2  ;;  %s134_s0 = scalar_lea.vmem %s107_s20, 32  ;;  %p139_p1 = scmp.lt.s32.totalorder %s107_s20, %s107_s20 }
   0x7   :  { %p135_p0 = scmp.ne.s32.totalorder %s107_s20, %s134_s0  ;;  %p140_p2 = scmp.lt.s32.totalorder %s134_s0, %s134_s0 }
   0x9   :  { %126 = vmatmul.mubr.msk.bf16.vlgmr.msra.gmra.mrb[0].mxu0 %vm40_vm2, %v23_v3  ;;  %p141_p3 = por %p140_p2, %p139_p1 }
   0xa   :  { %v22_v4 = vld [vmem:[#allocation2] sm:$0x3] }
   0xb   :  { %p142_p4 = pnand %p141_p3, %p135_p0 }
  0xdc   :  { %v78_v5 = vpop.f32.mrb[0].mxu0 }
  0xdd   :  { %v84_v6 = vadd.f32 %v78_v5, %v22_v4  ;;  %v127_v7 = vpop.f32.mrb[1].mxu0 }
  0xde   :  { %v81_v8 = vpop.f32.mrb[2].mxu0 }
  0xdf   :  { %86 = vst.msk [vmem:[#allocation2] sm:$0x3] %vm20_vm1, %v84_v6  ;;  %v128_v9 = vpop.f32.mrb[3].mxu0 }
  0xe6   :  { %v90_v11 = vld [vmem:[#allocation2] sm:$0x3] }
  0xe7   :  { %v98_v12 = vadd.f32 %v117_v10, %v90_v11 }
  0xe9   :  { %99 = vst.msk [vmem:[#allocation3] sm:$0x3] %vm20_vm1, %v98_v12 }
  0xea   :  { %145 = shalt.err (!%p142_p4)
}
  0xeb   :  { %s146_s23 = scalar_lea.hbm %s211_s3, 32 }
  0xec   :  { %p147_p5 = scmp.ne.s32.totalorder %s211_s3, %s146_s23  ;;  %p150_p6 = scmp.lt.u32.totalorder %s146_s23, %s211_s3 }
  0xee   :  { %p152_p7 = pnand %p150_p6, %p147_p5 }
  0xf0   :  { %155 = shalt.err (!%p152_p7)
}
  0xf1   :  { %109 = dma.vmem_to_hbm [thread:$0]  %s107_s20, 32, %s211_s3, [#allocation4]  }
  0xf2   :  { %156 = dma.done.wait [#allocation4], 32  }
  0xf3   :  { %157 = vsyncadd [#allocation4], 4294967264 }
  0xf4   :  { %113 = vsyncpa [#allocation4], 1 }

// kernel: vit_forward.17
= control target key start
LH: loop header
LB: loop body
LE: loop exit
PB: predicated region body
PF: predicated region fallthrough
CT: control target
= control target key end

     0   :  { %vm28_vm0 = vcmask 261120   ;;  %v499_v0 = vmov 0.0   ;;  %vm500_vm1 = vmmov 0   ;;  %vm368_vm2 = vcmask 257024   ;;  %s653_s1 = inlined_call_operand.vmem [shape: bf16[128,32], index: 1, kind: input, shape index: {}]   ;;  %s654_s0 = inlined_call_operand.vmem [shape: bf16[48,128], index: 0, kind: input, shape index: {}]   ;;  %s655_s3 = inlined_call_operand.vmem [shape: bf16[48,32], index: 3, kind: input, shape index: {}]   ;;  %s656_s2 = inlined_call_operand.vmem [shape: f32[1,32], index: 2, kind: input, shape index: {}]   ;;  %s657_s4 = inlined_call_operand.vmem [shape: f32[1,32], index: 4, kind: input, shape index: {}]   ;;  %s658_s5 = inlined_call_operand.vmem [shape: f32[1,32], index: 5, kind: input, shape index: {}]   ;;  %s659_s6 = inlined_call_operand.vmem [shape: bf16[48,32], index: 6, kind: output, shape index: {}]  }
   0x1   :  { %430 = vmatprep.subr.bf16.mxu0 %v499_v0  ;;  %458 = vmatprep.subr.bf16.mxu1 %v499_v0  ;;  %v476_v1 = vld [vmem:[%s653_s1] sm:$0xff]   ;;  %29 = vst.msk [vmem:[#allocation2] sm:$0xff] %vm28_vm0, %v499_v0  ;;  %30 = vst.msk [vmem:[#allocation2 + $0x8] sm:$0xff] %vm28_vm0, %v499_v0  ;;  %v477_v2 = vld [vmem:[%s653_s1 + $0x8] sm:$0xff]  }
   0x2   :  { %31 = vst.msk [vmem:[#allocation2 + $0x10] sm:$0xff] %vm28_vm0, %v499_v0  ;;  %32 = vst.msk [vmem:[#allocation2 + $0x18] sm:$0xff] %vm28_vm0, %v499_v0  ;;  %446 = vmatprep.mubr.msk.bf16.mxu0 %vm500_vm1, %v499_v0  ;;  %450 = vmatprep.mubr.msk.bf16.mxu1 %vm500_vm1, %v499_v0  ;;  %v478_v3 = vld [vmem:[%s653_s1 + $0x10] sm:$0xff]   ;;  %v479_v4 = vld [vmem:[%s653_s1 + $0x18] sm:$0xff]  }
   0x3   :  { %33 = vst.msk [vmem:[#allocation2 + $0x20] sm:$0xff] %vm28_vm0, %v499_v0  ;;  %34 = vst.msk [vmem:[#allocation2 + $0x28] sm:$0xff] %vm28_vm0, %v499_v0  ;;  %431 = vmatpush3.bf16.msra.mxu0 %v476_v1  ;;  %466 = vmatpush3.bf16.msra.mxu1 %v476_v1  ;;  %v480_v5 = vld [vmem:[%s653_s1 + $0x20] sm:$0xff]   ;;  %v481_v6 = vld [vmem:[%s653_s1 + $0x28] sm:$0xff]  }
   0x4   :  { %432 = vmatprep.subr.bf16.mxu0 %v499_v0  ;;  %459 = vmatprep.subr.bf16.mxu1 %v499_v0  ;;  %v482_v7 = vld [vmem:[%s653_s1 + $0x30] sm:$0xff]   ;;  %v483_v8 = vld [vmem:[%s653_s1 + $0x38] sm:$0xff]   ;;  %v484_v9 = vld [vmem:[%s654_s0] sm:$0xff]  }
   0x5   :  { %v485_v10 = vld [vmem:[%s654_s0 + $0x8] sm:$0xff]   ;;  %v486_v11 = vld [vmem:[%s654_s0 + $0x10] sm:$0xff]   ;;  %v406_v30 = vld [vmem:[%s655_s3] sm:$0xff]  }
   0x6   :  { %v417_v29 = vld [vmem:[%s655_s3 + $0x8] sm:$0xff]   ;;  %v390_v33 = vld [vmem:[%s656_s2] ss:$0 sm:$0xff]  ;;  %v407_v37 = vunpack.c.l.bf16 %v406_v30  ;;  %v408_v46 = vunpack.c.h.bf16 %v406_v30  ;;  %v418_v53 = vld [vmem:[%s655_s3 + $0x10] sm:$0xff]  }
   0x7   :  { %433 = vmatpush3.bf16.msra.mxu0 %v477_v2  ;;  %467 = vmatpush3.bf16.msra.mxu1 %v477_v2  ;;  %v411_v36 = vunpack.c.l.bf16 %v417_v29  ;;  %v412_v41 = vunpack.c.h.bf16 %v417_v29  ;;  %v415_v58 = vunpack.c.l.bf16 %v418_v53  ;;  %v416_v63 = vunpack.c.h.bf16 %v418_v53 }
   0x8   :  { %434 = vmatprep.subr.bf16.mxu0 %v499_v0  ;;  %460 = vmatprep.subr.bf16.mxu1 %v499_v0  ;;  %v35_v12 = vld [vmem:[#allocation2] sm:$0xff]  ;;  %v36_v16 = vld [vmem:[#allocation2 + $0x8] sm:$0xff] }
   0x9   :  { %v37_v13 = vld [vmem:[#allocation2 + $0x10] sm:$0xff]  ;;  %v38_v17 = vld [vmem:[#allocation2 + $0x18] sm:$0xff] }
   0xa   :  { %v39_v28 = vld [vmem:[#allocation2 + $0x20] sm:$0xff]  ;;  %v40_v32 = vld [vmem:[#allocation2 + $0x28] sm:$0xff] }
   0xb   :  { %435 = vmatpush3.bf16.msra.mxu0 %v478_v3  ;;  %468 = vmatpush3.bf16.msra.mxu1 %v478_v3 }
   0xc   :  { %436 = vmatprep.subr.bf16.mxu0 %v499_v0  ;;  %461 = vmatprep.subr.bf16.mxu1 %v499_v0 }
   0xf   :  { %437 = vmatpush3.bf16.msra.mxu0 %v479_v4  ;;  %469 = vmatpush3.bf16.msra.mxu1 %v479_v4 }
  0x10   :  { %438 = vmatprep.subr.bf16.mxu0 %v499_v0  ;;  %462 = vmatprep.subr.bf16.mxu1 %v499_v0 }
  0x13   :  { %439 = vmatpush3.bf16.msra.mxu0 %v480_v5  ;;  %470 = vmatpush3.bf16.msra.mxu1 %v480_v5 }
  0x14   :  { %440 = vmatprep.subr.bf16.mxu0 %v499_v0  ;;  %463 = vmatprep.subr.bf16.mxu1 %v499_v0 }
  0x17   :  { %441 = vmatpush3.bf16.msra.mxu0 %v481_v6  ;;  %471 = vmatpush3.bf16.msra.mxu1 %v481_v6 }
  0x18   :  { %442 = vmatprep.subr.bf16.mxu0 %v499_v0  ;;  %464 = vmatprep.subr.bf16.mxu1 %v499_v0 }
  0x1b   :  { %443 = vmatpush3.bf16.msra.mxu0 %v482_v7  ;;  %472 = vmatpush3.bf16.msra.mxu1 %v482_v7 }
  0x1c   :  { %444 = vmatprep.subr.bf16.mxu0 %v499_v0  ;;  %465 = vmatprep.subr.bf16.mxu1 %v499_v0 }
  0x1f   :  { %445 = vmatpush3.bf16.msra.mxu0 %v483_v8  ;;  %473 = vmatpush3.bf16.msra.mxu1 %v483_v8 }
  0x22   :  { %447 = vmatmul.mubr.bf16.vlgmr.msra.gmra.mrb[0].mxu0 %v484_v9  ;;  %451 = vmatmul.mubr.bf16.vlgmr.msra.gmra.mrb[0].mxu1 %v485_v10 }
  0x23   :  { %454 = vmatprep.mubr.msk.bf16.mxu1 %vm500_vm1, %v499_v0 }
  0x2a   :  { %455 = vmatmul.mubr.bf16.gmra.mrb[4].mxu1 %v486_v11 }
  0xf5   :  { %v163_v14 = vpop.f32.mrb[0].mxu0  ;;  %v171_v15 = vpop.f32.mrb[0].mxu1 }
  0xf6   :  { %v186_v18 = vadd.f32 %v163_v14, %v35_v12  ;;  %v188_v19 = vadd.f32 %v171_v15, %v37_v13  ;;  %v448_v20 = vpop.f32.mrb[1].mxu0  ;;  %v452_v21 = vpop.f32.mrb[1].mxu1 }
  0xf7   :  { %v166_v22 = vpop.f32.mrb[2].mxu0  ;;  %v174_v23 = vpop.f32.mrb[2].mxu1 }
  0xf8   :  { %193 = vst.msk [vmem:[#allocation2] sm:$0xff] %vm28_vm0, %v186_v18  ;;  %195 = vst.msk [vmem:[#allocation2 + $0x10] sm:$0xff] %vm28_vm0, %v188_v19  ;;  %v187_v24 = vadd.f32 %v166_v22, %v36_v16  ;;  %v189_v25 = vadd.f32 %v174_v23, %v38_v17  ;;  %v449_v26 = vpop.f32.mrb[3].mxu0  ;;  %v453_v27 = vpop.f32.mrb[3].mxu1 }
  0xfa   :  { %194 = vst.msk [vmem:[#allocation2 + $0x8] sm:$0xff] %vm28_vm0, %v187_v24  ;;  %196 = vst.msk [vmem:[#allocation2 + $0x18] sm:$0xff] %vm28_vm0, %v189_v25 }
  0xfd   :  { %v179_v31 = vpop.f32.mrb[4].mxu1 }
  0xfe   :  { %v190_v34 = vadd.f32 %v179_v31, %v39_v28  ;;  %v456_v35 = vpop.f32.mrb[5].mxu1 }
  0xff   :  { %v182_v38 = vpop.f32.mrb[6].mxu1  ;;  %v204_v39 = vld [vmem:[#allocation2 + $0x10] sm:$0xff]  ;;  %v202_v40 = vld [vmem:[#allocation2] sm:$0xff] }
 0x100   :  { %197 = vst.msk [vmem:[#allocation2 + $0x20] sm:$0xff] %vm28_vm0, %v190_v34  ;;  %v191_v42 = vadd.f32 %v182_v38, %v40_v32  ;;  %v457_v43 = vpop.f32.mrb[7].mxu1  ;;  %v217_v44 = vadd.f32 %v390_v33, %v204_v39  ;;  %v215_v45 = vadd.f32 %v390_v33, %v202_v40 }
 0x101   :  { %v205_v47 = vld [vmem:[#allocation2 + $0x18] sm:$0xff]  ;;  %v203_v48 = vld [vmem:[#allocation2 + $0x8] sm:$0xff] }
 0x102   :  { %198 = vst.msk [vmem:[#allocation2 + $0x28] sm:$0xff] %vm28_vm0, %v191_v42  ;;  %v235_v49 = vadd.f32 %v411_v36, %v217_v44  ;;  %v233_v50 = vadd.f32 %v407_v37, %v215_v45  ;;  %v218_v51 = vadd.f32 %v390_v33, %v205_v47  ;;  %v216_v52 = vadd.f32 %v390_v33, %v203_v48 }
 0x104   :  { %v245_v54 = vsel %vm28_vm0, %v235_v49, 0.0  ;;  %v239_v55 = vsel %vm28_vm0, %v233_v50, 0.0  ;;  %v236_v56 = vadd.f32 %v412_v41, %v218_v51  ;;  %v234_v57 = vadd.f32 %v408_v46, %v216_v52 }
 0x105   :  { %246 = vadd.xlane.f32.xlu1 %v245_v54  ;;  %240 = vadd.xlane.f32.xlu0 %v239_v55  ;;  %v391_v54 = vld [vmem:[%s657_s4] ss:$0 sm:$0xff] }
 0x106   :  { %v248_v60 = vsel %vm28_vm0, %v236_v56, 0.0  ;;  %v242_v61 = vsel %vm28_vm0, %v234_v57, 0.0 }
 0x107   :  { %v206_v59 = vld [vmem:[#allocation2 + $0x20] sm:$0xff] }
 0x108   :  { %v219_v62 = vadd.f32 %v390_v33, %v206_v59 }
 0x109   :  { %249 = vadd.xlane.f32.xlu1 %v248_v60  ;;  %243 = vadd.xlane.f32.xlu0 %v242_v61  ;;  %v207_v0 = vld [vmem:[#allocation2 + $0x28] sm:$0xff] }
 0x10a   :  { %v237_v1 = vadd.f32 %v415_v58, %v219_v62  ;;  %v220_v2 = vadd.f32 %v390_v33, %v207_v0 }
 0x10c   :  { %v251_v3 = vsel %vm28_vm0, %v237_v1, 0.0  ;;  %v238_v4 = vadd.f32 %v416_v63, %v220_v2 }
 0x10d   :  { %252 = vadd.xlane.f32.xlu0 %v251_v3 }
 0x10e   :  { %v254_v5 = vsel %vm28_vm0, %v238_v4, 0.0 }
 0x10f   :  { %255 = vadd.xlane.f32.xlu1 %v254_v5 }
 0x192   :  { %v247_v6 = vpop.xlane.xlu1 %246  ;;  %v241_v7 = vpop.xlane.xlu0 %240 }
 0x193   :  { %v260_v8 = vmul.f32 0.03125, %v247_v6  ;;  %v258_v9 = vmul.f32 0.03125, %v241_v7 }
 0x195   :  { %v602_v10 = vsub.f32 %v235_v49, %v260_v8  ;;  %v264_v11 = vsub.f32 %v233_v50, %v258_v9 }
 0x196   :  { %v250_v12 = vpop.xlane.xlu1 %249  ;;  %v244_v13 = vpop.xlane.xlu0 %243 }
 0x197   :  { %v261_v14 = vmul.f32 0.03125, %v250_v12  ;;  %v259_v15 = vmul.f32 0.03125, %v244_v13  ;;  %v270_v16 = vmul.f32 %v264_v11, %v264_v11  ;;  %v272_v17 = vmul.f32 %v602_v10, %v602_v10 }
 0x199   :  { %v606_v18 = vsub.f32 %v236_v56, %v261_v14  ;;  %v265_v19 = vsub.f32 %v234_v57, %v259_v15  ;;  %v276_v20 = vsel %vm28_vm0, %v270_v16, 0.0  ;;  %v282_v25 = vsel %vm28_vm0, %v272_v17, 0.0  ;;  %v392_v57 = vld [vmem:[%s658_s5] ss:$0 sm:$0xff] }
 0x19a   :  { %277 = vadd.xlane.f32.xlu0 %v276_v20  ;;  %v253_v21 = vpop.xlane.xlu0 %252 }
 0x19b   :  { %v262_v22 = vmul.f32 0.03125, %v253_v21  ;;  %v271_v23 = vmul.f32 %v265_v19, %v265_v19  ;;  %v273_v29 = vmul.f32 %v606_v18, %v606_v18 }
 0x19c   :  { %v256_v24 = vpop.xlane.xlu1 %255 }
 0x19d   :  { %v268_v26 = vsub.f32 %v237_v1, %v262_v22  ;;  %v263_v27 = vmul.f32 0.03125, %v256_v24  ;;  %v279_v28 = vsel %vm28_vm0, %v271_v23, 0.0  ;;  %v285_v32 = vsel %vm28_vm0, %v273_v29, 0.0 }
 0x19e   :  { %283 = vadd.xlane.f32.xlu0 %v282_v25  ;;  %280 = vadd.xlane.f32.xlu1 %v279_v28 }
 0x19f   :  { %v613_v30 = vsub.f32 %v238_v4, %v263_v27  ;;  %v274_v31 = vmul.f32 %v268_v26, %v268_v26 }
 0x1a1   :  { %v288_v33 = vsel %vm28_vm0, %v274_v31, 0.0  ;;  %v275_v34 = vmul.f32 %v613_v30, %v613_v30 }
 0x1a2   :  { %286 = vadd.xlane.f32.xlu1 %v285_v32  ;;  %289 = vadd.xlane.f32.xlu0 %v288_v33 }
 0x1a3   :  { %v291_v35 = vsel %vm28_vm0, %v275_v34, 0.0 }
 0x1a6   :  { %292 = vadd.xlane.f32.xlu1 %v291_v35 }
 0x227   :  { %v278_v36 = vpop.xlane.xlu0 %277 }
 0x228   :  { %v294_v37 = vmul.f32 0.03125, %v278_v36 }
 0x22a   :  { %v300_v38 = vadd.f32 1e-05, %v294_v37 }
 0x22b   :  { %v281_v39 = vpop.xlane.xlu1 %280  ;;  %v284_v40 = vpop.xlane.xlu0 %283 }
 0x22c   :  { %487 = vrsqrt.f32 %v300_v38  ;;  %v295_v41 = vmul.f32 0.03125, %v281_v39  ;;  %v296_v42 = vmul.f32 0.03125, %v284_v40 }
 0x22e   :  { %v301_v43 = vadd.f32 1e-05, %v295_v41  ;;  %v302_v44 = vadd.f32 1e-05, %v296_v42 }
 0x22f   :  { %v287_v45 = vpop.xlane.xlu1 %286  ;;  %v290_v46 = vpop.xlane.xlu0 %289 }
 0x230   :  { %489 = vrsqrt.f32 %v301_v43  ;;  %v297_v47 = vmul.f32 0.03125, %v287_v45  ;;  %v298_v48 = vmul.f32 0.03125, %v290_v46 }
 0x231   :  { %491 = vrsqrt.f32 %v302_v44 }
 0x232   :  { %v303_v49 = vadd.f32 1e-05, %v297_v47  ;;  %v304_v50 = vadd.f32 1e-05, %v298_v48 }
 0x233   :  { %v293_v51 = vpop.xlane.xlu1 %292 }
 0x234   :  { %493 = vrsqrt.f32 %v303_v49  ;;  %v299_v52 = vmul.f32 0.03125, %v293_v51 }
 0x235   :  { %495 = vrsqrt.f32 %v304_v50 }
 0x236   :  { %v488_v53 = vpop.eup %487  ;;  %v305_v55 = vadd.f32 1e-05, %v299_v52 }
 0x237   :  { %v312_v56 = vmul.f32 %v488_v53, %v264_v11 }
 0x238   :  { %497 = vrsqrt.f32 %v305_v55 }
 0x239   :  { %v325_v58 = vmul.f32 %v391_v54, %v312_v56 }
 0x23a   :  { %v490_v59 = vpop.eup %489 }
 0x23b   :  { %v492_v60 = vpop.eup %491  ;;  %v338_v61 = vadd.f32 %v392_v57, %v325_v58  ;;  %v313_v62 = vmul.f32 %v490_v59, %v265_v19 }
 0x23c   :  { %v314_v63 = vmul.f32 %v492_v60, %v602_v10 }
 0x23d   :  { %v399_v0 = vpack.c.bf16 %v338_v61, %v338_v61  ;;  %v326_v1 = vmul.f32 %v391_v54, %v313_v62 }
 0x23e   :  { %v494_v2 = vpop.eup %493  ;;  %v327_v3 = vmul.f32 %v391_v54, %v314_v63 }
 0x23f   :  { %v496_v4 = vpop.eup %495  ;;  %369 = vst.msk [vmem:[%s659_s6] sm:$0xf] %vm368_vm2, %v399_v0  ;;  %v339_v5 = vadd.f32 %v392_v57, %v326_v1  ;;  %v315_v6 = vmul.f32 %v494_v2, %v606_v18 }
 0x240   :  { %v340_v7 = vadd.f32 %v392_v57, %v327_v3  ;;  %v316_v8 = vmul.f32 %v496_v4, %v268_v26 }
 0x241   :  { %v400_v9 = vpack.c.bf16 %v339_v5, %v339_v5  ;;  %v328_v11 = vmul.f32 %v391_v54, %v315_v6 }
 0x242   :  { %v498_v12 = vpop.eup %497  ;;  %v401_v13 = vpack.c.bf16 %v340_v7, %v340_v7  ;;  %v329_v10 = vmul.f32 %v391_v54, %v316_v8 }
 0x243   :  { %370 = vst.msk [vmem:[%s659_s6 + $0x4] sm:$0xf] %vm368_vm2, %v400_v9  ;;  %v341_v14 = vadd.f32 %v392_v57, %v328_v11  ;;  %v317_v15 = vmul.f32 %v498_v12, %v613_v30 }
 0x244   :  { %371 = vst.msk [vmem:[%s659_s6 + $0x8] sm:$0xf] %vm368_vm2, %v401_v13  ;;  %v342_v16 = vadd.f32 %v392_v57, %v329_v10 }
 0x245   :  { %v402_v17 = vpack.c.bf16 %v341_v14, %v341_v14  ;;  %v330_v18 = vmul.f32 %v391_v54, %v317_v15 }
 0x246   :  { %v403_v19 = vpack.c.bf16 %v342_v16, %v342_v16 }
 0x247   :  { %372 = vst.msk [vmem:[%s659_s6 + $0xc] sm:$0xf] %vm368_vm2, %v402_v17  ;;  %v343_v20 = vadd.f32 %v392_v57, %v330_v18 }
 0x248   :  { %373 = vst.msk [vmem:[%s659_s6 + $0x10] sm:$0xf] %vm368_vm2, %v403_v19 }
 0x249   :  { %v404_v21 = vpack.c.bf16 %v343_v20, %v343_v20 }
 0x24b   :  { %374 = vst.msk [vmem:[%s659_s6 + $0x14] sm:$0xf] %vm368_vm2, %v404_v21 }

</bundles_post_ra>
